<compile_context>
chip_gen: v7x
topology: tpu7x:2x2x1
jax: 0.10.0
libtpu: 0.0.40
codegen_flags: <defaults>
</compile_context>

<pallas_src>
import functools

import jax
import jax.numpy as jnp
from jax.experimental import pallas as pl
from jax.experimental.pallas import tpu as pltpu

NEG_SLOPE = 0.1  # LeakyReLU slope used by Conv2dNormRelu


# ----------------------------------------------------------------------------- fused kernel
def _fused_flow_estimator_kernel(
    mask_ref, x_ref, w1_ref, b1_ref, w2_ref, b2_ref, wfe_ref, bfe_ref, *rest,
    feat_ch, corr_ch, Wp, conv_last):
    if conv_last:
        wl_ref, bl_ref, ff_ref, flow_ref = rest
    else:
        (ff_ref,) = rest

    mask = mask_ref[...]            # (1, N): 1.0 on interior pixels, 0.0 on pad ring / lane tail
    x = x_ref[...]                  # (Cin, N): channel-major, spatially zero-padded + flattened
    n = x.shape[-1]                 # static, multiple of 128

    # 3x3 tap offsets in the padded-flat index space (row stride = Wp), tap order ky*3+kx
    shifts = tuple(dy * Wp + dx for dy in (-1, 0, 1) for dx in (-1, 0, 1))

    def conv3x3(inp, w_ref, b_ref, leaky):
        # inp: (Cin, N); w_ref: (9, Cout, Cin); b_ref: (Cout, 1)
        acc = jnp.dot(w_ref[4], inp, preferred_element_type=jnp.float32)  # center tap (s == 0)
        for t, s in enumerate(shifts):
            if s == 0:
                continue
            # shifted[:, p] == inp[:, p + s]  (wrap only touches the pad ring, masked below)
            shifted = pltpu.roll(inp, shift=(-s) % n, axis=1)
            acc = acc + jnp.dot(w_ref[t], shifted, preferred_element_type=jnp.float32)
        y = acc + b_ref[...]
        if leaky:
            y = jnp.where(y >= 0.0, y, NEG_SLOPE * y)
        return y * mask             # re-zero the padding ring: next conv relies on it

    # corr_modulator: two 3x3 Conv2dNormRelu layers (norm=None -> conv + bias + LeakyReLU)
    h1 = conv3x3(x, w1_ref, b1_ref, leaky=True)            # (2*corr_ch, N)
    corr_mod = conv3x3(h1, w2_ref, b2_ref, leaky=True)     # (2*corr_ch, N)

    # corr is a channel slice of the concatenated input tmp = [feat, corr, conf, flow]
    corr = x[feat_ch:feat_ch + corr_ch, :]                 # (corr_ch, N), zero on pad ring
    corr_mul = 2.0 * jax.nn.sigmoid(corr_mod[:corr_ch, :])
    corr_add = corr_mod[corr_ch:, :]
    corr_new = corr_mul * corr + corr_add                  # zero on pad ring by construction

    # flow_encoder: 1x1 conv == channel-major GEMM + bias + LeakyReLU
    ff = jnp.dot(wfe_ref[...], corr_new, preferred_element_type=jnp.float32) + bfe_ref[...]
    ff = jnp.where(ff >= 0.0, ff, NEG_SLOPE * ff)
    ff = ff * mask                                         # zero padding ring for conv_last
    ff_ref[...] = ff.astype(ff_ref.dtype)

    if conv_last:
        flow = conv3x3(ff, wl_ref, bl_ref, leaky=False)    # (2, N), no activation
        flow_ref[...] = flow.astype(flow_ref.dtype)


# ----------------------------------------------------------------------------- host glue
def _channel_major_padded_flat(x_nchw, n_flat):
    """(B, C, H, W) -> (B, C, n_flat): pad spatially by 1, flatten HW, pad lane axis."""
    B, C, H, W = x_nchw.shape
    xp = jnp.pad(x_nchw, ((0, 0), (0, 0), (1, 1), (1, 1)))
    flat = xp.reshape(B, C, (H + 2) * (W + 2))
    return jnp.pad(flat, ((0, 0), (0, 0), (0, n_flat - flat.shape[-1])))


def _interior_mask(H, W, n_flat):
    Hp, Wp = H + 2, W + 2
    hp = jnp.arange(Hp)[:, None]
    wp = jnp.arange(Wp)[None, :]
    m = ((hp >= 1) & (hp <= H) & (wp >= 1) & (wp <= W)).astype(jnp.float32)
    return jnp.pad(m.reshape(1, Hp * Wp), ((0, 0), (0, n_flat - Hp * Wp)))


def _conv_w_to_kernel(w_hwio):
    """(3,3,Cin,Cout) HWIO -> (9, Cout, Cin), tap order t = ky*3 + kx."""
    kh, kw, cin, cout = w_hwio.shape
    return jnp.transpose(w_hwio, (0, 1, 3, 2)).reshape(kh * kw, cout, cin)


# ----------------------------------------------------------------------------- model
def init_params(key, feat_ch, corr_ch, conf_ch, flow_ch, flow_feat_dim=32, conv_last=True):
    cin = feat_ch + corr_ch + conf_ch + flow_ch
    hid = 2 * corr_ch
    ks = jax.random.split(key, 8)
    p = {
        "w1": 0.1 * jax.random.normal(ks[0], (3, 3, cin, hid), jnp.float32),
        "b1": 0.05 * jax.random.normal(ks[1], (hid,), jnp.float32),
        "w2": 0.1 * jax.random.normal(ks[2], (3, 3, hid, hid), jnp.float32),
        "b2": 0.05 * jax.random.normal(ks[3], (hid,), jnp.float32),
        "w_fe": 0.1 * jax.random.normal(ks[4], (corr_ch, flow_feat_dim), jnp.float32),
        "b_fe": 0.05 * jax.random.normal(ks[5], (flow_feat_dim,), jnp.float32),
    }
    if conv_last:
        p["w_last"] = 0.1 * jax.random.normal(ks[6], (3, 3, flow_feat_dim, 2), jnp.float32)
        p["b_last"] = 0.05 * jax.random.normal(ks[7], (2,), jnp.float32)
    return p


def flow_estimator_2d(params, feat, corr, feat_conf, last_flow, corr_ch, conv_last=True):
    """NCHW inputs (like the PyTorch module); returns NCHW flow_feat[, flow]."""
    B, feat_ch, H, W = feat.shape
    Hp, Wp = H + 2, W + 2
    n_flat = max(128, ((Hp * Wp + 127) // 128) * 128)   # lane-dense flat length

    # tmp = cat([feat, corr, feat_conf, last_flow], dim=1), then channel-major padded-flat
    tmp = jnp.concatenate([feat, corr, feat_conf, last_flow], axis=1)
    cin = tmp.shape[1]
    x = _channel_major_padded_flat(tmp, n_flat)         # (B, Cin, N)
    mask = _interior_mask(H, W, n_flat)                 # (1, N)

    hid = 2 * corr_ch
    fdim = params["w_fe"].shape[1]

    # kernel-layout weights / biases (all tiny, VMEM-resident for the whole call)
    w1 = _conv_w_to_kernel(params["w1"]); b1 = params["b1"].reshape(hid, 1)
    w2 = _conv_w_to_kernel(params["w2"]); b2 = params["b2"].reshape(hid, 1)
    wfe = params["w_fe"].T                              # (F, corr_ch)
    bfe = params["b_fe"].reshape(fdim, 1)

    in_arrays = [mask, x, w1, b1, w2, b2, wfe, bfe]
    in_specs = [
        pl.BlockSpec((1, n_flat), lambda b: (0, 0)),
        pl.BlockSpec((None, cin, n_flat), lambda b: (b, 0, 0)),   # squeezed batch dim
        pl.BlockSpec(w1.shape, lambda b: (0, 0, 0)),
        pl.BlockSpec(b1.shape, lambda b: (0, 0)),
        pl.BlockSpec(w2.shape, lambda b: (0, 0, 0)),
        pl.BlockSpec(b2.shape, lambda b: (0, 0)),
        pl.BlockSpec(wfe.shape, lambda b: (0, 0)),
        pl.BlockSpec(bfe.shape, lambda b: (0, 0)),
    ]
    out_shapes = [jax.ShapeDtypeStruct((B, fdim, n_flat), jnp.float32)]
    out_specs = [pl.BlockSpec((None, fdim, n_flat), lambda b: (b, 0, 0))]

    if conv_last:
        wl = _conv_w_to_kernel(params["w_last"]); bl = params["b_last"].reshape(2, 1)
        in_arrays += [wl, bl]
        in_specs += [pl.BlockSpec(wl.shape, lambda b: (0, 0, 0)),
                     pl.BlockSpec(bl.shape, lambda b: (0, 0))]
        out_shapes.append(jax.ShapeDtypeStruct((B, 2, n_flat), jnp.float32))
        out_specs.append(pl.BlockSpec((None, 2, n_flat), lambda b: (b, 0, 0)))

    kernel = functools.partial(
        _fused_flow_estimator_kernel,
        feat_ch=feat_ch, corr_ch=corr_ch, Wp=Wp, conv_last=conv_last)

    outs = pl.pallas_call(
        kernel,
        out_shape=tuple(out_shapes),
        grid=(B,),
        in_specs=in_specs,
        out_specs=tuple(out_specs),
        compiler_params=pltpu.CompilerParams(dimension_semantics=("parallel",)),
    )(*in_arrays)

    def crop(y):  # (B, C, N) padded-flat -> (B, C, H, W)
        return y[:, :, :Hp * Wp].reshape(B, -1, Hp, Wp)[:, :, 1:H + 1, 1:W + 1]

    if conv_last:
        ff_flat, flow_flat = outs
        return crop(ff_flat), crop(flow_flat)
    (ff_flat,) = outs
    return crop(ff_flat)


# ----------------------------------------------------------------------------- reference (pure JAX)
def _ref_conv3x3(x_nhwc, w, b, leaky):
    y = jax.lax.conv_general_dilated(
        x_nhwc, w, window_strides=(1, 1), padding="SAME",
        dimension_numbers=("NHWC", "HWIO", "NHWC")) + b
    return jnp.where(y >= 0.0, y, NEG_SLOPE * y) if leaky else y


def flow_estimator_2d_ref(params, feat, corr, feat_conf, last_flow, corr_ch, conv_last=True):
    to_nhwc = lambda a: jnp.transpose(a, (0, 2, 3, 1))
    to_nchw = lambda a: jnp.transpose(a, (0, 3, 1, 2))
    tmp = jnp.concatenate(
        [to_nhwc(feat), to_nhwc(corr), to_nhwc(feat_conf), to_nhwc(last_flow)], axis=-1)
    h1 = _ref_conv3x3(tmp, params["w1"], params["b1"], True)
    corr_mod = _ref_conv3x3(h1, params["w2"], params["b2"], True)
    corr_mul = 2.0 * jax.nn.sigmoid(corr_mod[..., :corr_ch])
    corr_add = corr_mod[..., corr_ch:]
    corr_new = corr_mul * to_nhwc(corr) + corr_add
    ff = jnp.einsum("bhwc,cf->bhwf", corr_new, params["w_fe"]) + params["b_fe"]
    ff = jnp.where(ff >= 0.0, ff, NEG_SLOPE * ff)
    if conv_last:
        flow = _ref_conv3x3(ff, params["w_last"], params["b_last"], False)
        return to_nchw(ff), to_nchw(flow)
    return to_nchw(ff)


# ----------------------------------------------------------------------------- main
if __name__ == "__main__":
    feat_ch, corr_ch, conf_ch, flow_ch = 4, 8, 1, 2
    B, H, W = 2, 16, 16

    key = jax.random.PRNGKey(0)
    k_f, k_c, k_cf, k_fl, k_p = jax.random.split(key, 5)

    # PyTorch-style NCHW inputs (module layout)
    feat = jax.random.normal(k_f, (B, feat_ch, H, W), jnp.float32)
    corr = jax.random.normal(k_c, (B, corr_ch, H, W), jnp.float32)
    conf = jax.random.normal(k_cf, (B, conf_ch, H, W), jnp.float32)
    flow0 = jax.random.normal(k_fl, (B, flow_ch, H, W), jnp.float32)

    params = init_params(k_p, feat_ch, corr_ch, conf_ch, flow_ch, conv_last=True)

    run = jax.jit(functools.partial(flow_estimator_2d, corr_ch=corr_ch, conv_last=True))
    flow_feat, flow = run(params, feat, corr, conf, flow0)
    jax.block_until_ready((flow_feat, flow))

    # sanity check against pure-JAX reference
    ff_ref, fl_ref = flow_estimator_2d_ref(params, feat, corr, conf, flow0,
                                           corr_ch, conv_last=True)
    assert flow_feat.shape == (B, 32, H, W) and flow.shape == (B, 2, H, W)
    assert jnp.allclose(flow_feat, ff_ref, atol=1e-4, rtol=1e-4)
    assert jnp.allclose(flow, fl_ref, atol=1e-4, rtol=1e-4)

    print("KERNEL_OK")
</pallas_src>

<mosaic_0001>
module attributes {stable_mosaic.version = 11 : i64} {
  func.func @_fused_flow_estimator_kernel(%arg0: i32, %arg1: memref<1x384xf32, #tpu.memory_space<vmem>>, %arg2: memref<1x15x384xf32, #tpu.memory_space<vmem>>, %arg3: memref<9x16x15xf32, #tpu.memory_space<vmem>>, %arg4: memref<16x1xf32, #tpu.memory_space<vmem>>, %arg5: memref<9x16x16xf32, #tpu.memory_space<vmem>>, %arg6: memref<16x1xf32, #tpu.memory_space<vmem>>, %arg7: memref<32x8xf32, #tpu.memory_space<vmem>>, %arg8: memref<32x1xf32, #tpu.memory_space<vmem>>, %arg9: memref<9x2x32xf32, #tpu.memory_space<vmem>>, %arg10: memref<2x1xf32, #tpu.memory_space<vmem>>, %arg11: memref<1x32x384xf32, #tpu.memory_space<vmem>>, %arg12: memref<1x2x384xf32, #tpu.memory_space<vmem>>) attributes {dimension_semantics = [#tpu.dimension_semantics<parallel>], iteration_bounds = array<i64: 2>, scalar_prefetch = 0 : i64, scratch_operands = 0 : i64, tpu.core_type = #tpu.core_type<tc>, window_params = [{pipeline_mode = #tpu.pipeline_mode<synchronous>, transform_indices = @transform_0, window_bounds = array<i64: 1, 384>}, {transform_indices = @transform_1, window_bounds = array<i64: 1, 15, 384>}, {pipeline_mode = #tpu.pipeline_mode<synchronous>, transform_indices = @transform_2, window_bounds = array<i64: 9, 16, 15>}, {pipeline_mode = #tpu.pipeline_mode<synchronous>, transform_indices = @transform_3, window_bounds = array<i64: 16, 1>}, {pipeline_mode = #tpu.pipeline_mode<synchronous>, transform_indices = @transform_4, window_bounds = array<i64: 9, 16, 16>}, {pipeline_mode = #tpu.pipeline_mode<synchronous>, transform_indices = @transform_5, window_bounds = array<i64: 16, 1>}, {pipeline_mode = #tpu.pipeline_mode<synchronous>, transform_indices = @transform_6, window_bounds = array<i64: 32, 8>}, {pipeline_mode = #tpu.pipeline_mode<synchronous>, transform_indices = @transform_7, window_bounds = array<i64: 32, 1>}, {pipeline_mode = #tpu.pipeline_mode<synchronous>, transform_indices = @transform_8, window_bounds = array<i64: 9, 2, 32>}, {pipeline_mode = #tpu.pipeline_mode<synchronous>, transform_indices = @transform_9, window_bounds = array<i64: 2, 1>}, {transform_indices = @transform_10, window_bounds = array<i64: 1, 32, 384>}, {transform_indices = @transform_11, window_bounds = array<i64: 1, 2, 384>}]} {
    %c0 = arith.constant 0 : index
    %c0_0 = arith.constant 0 : index
    %0 = vector.load %arg1[%c0, %c0_0] : memref<1x384xf32, #tpu.memory_space<vmem>>, vector<1x384xf32>
    %c0_1 = arith.constant 0 : index
    %c0_2 = arith.constant 0 : index
    %c0_3 = arith.constant 0 : index
    %1 = vector.load %arg2[%c0_1, %c0_2, %c0_3] : memref<1x15x384xf32, #tpu.memory_space<vmem>>, vector<1x15x384xf32>
    %2 = vector.shape_cast %1 : vector<1x15x384xf32> to vector<15x384xf32>
    %c4 = arith.constant 4 : index
    %c0_4 = arith.constant 0 : index
    %c0_5 = arith.constant 0 : index
    %3 = vector.load %arg3[%c4, %c0_4, %c0_5] : memref<9x16x15xf32, #tpu.memory_space<vmem>>, vector<1x16x15xf32>
    %4 = vector.shape_cast %3 : vector<1x16x15xf32> to vector<16x15xf32>
    %cst = arith.constant dense<0.000000e+00> : vector<16x384xf32>
    %5 = tpu.matmul %4, %2, %cst {dimension_numbers = #tpu.dot_dimension_numbers<[1], [0], [0], [1], [0, 0, 1, 1], [], []>} : vector<16x15xf32>, vector<15x384xf32>, vector<16x384xf32> -> vector<16x384xf32>
    %c19_i32 = arith.constant 19 : i32
    %6 = tpu.dynamic_rotate %2 by %c19_i32 dim 1 : vector<15x384xf32>, i32 -> vector<15x384xf32>
    %c0_6 = arith.constant 0 : index
    %c0_7 = arith.constant 0 : index
    %c0_8 = arith.constant 0 : index
    %7 = vector.load %arg3[%c0_6, %c0_7, %c0_8] : memref<9x16x15xf32, #tpu.memory_space<vmem>>, vector<1x16x15xf32>
    %8 = vector.shape_cast %7 : vector<1x16x15xf32> to vector<16x15xf32>
    %cst_9 = arith.constant dense<0.000000e+00> : vector<16x384xf32>
    %9 = tpu.matmul %8, %6, %cst_9 {dimension_numbers = #tpu.dot_dimension_numbers<[1], [0], [0], [1], [0, 0, 1, 1], [], []>} : vector<16x15xf32>, vector<15x384xf32>, vector<16x384xf32> -> vector<16x384xf32>
    %10 = arith.addf %5, %9 : vector<16x384xf32>
    %c18_i32 = arith.constant 18 : i32
    %11 = tpu.dynamic_rotate %2 by %c18_i32 dim 1 : vector<15x384xf32>, i32 -> vector<15x384xf32>
    %c1 = arith.constant 1 : index
    %c0_10 = arith.constant 0 : index
    %c0_11 = arith.constant 0 : index
    %12 = vector.load %arg3[%c1, %c0_10, %c0_11] : memref<9x16x15xf32, #tpu.memory_space<vmem>>, vector<1x16x15xf32>
    %13 = vector.shape_cast %12 : vector<1x16x15xf32> to vector<16x15xf32>
    %cst_12 = arith.constant dense<0.000000e+00> : vector<16x384xf32>
    %14 = tpu.matmul %13, %11, %cst_12 {dimension_numbers = #tpu.dot_dimension_numbers<[1], [0], [0], [1], [0, 0, 1, 1], [], []>} : vector<16x15xf32>, vector<15x384xf32>, vector<16x384xf32> -> vector<16x384xf32>
    %15 = arith.addf %10, %14 : vector<16x384xf32>
    %c17_i32 = arith.constant 17 : i32
    %16 = tpu.dynamic_rotate %2 by %c17_i32 dim 1 : vector<15x384xf32>, i32 -> vector<15x384xf32>
    %c2 = arith.constant 2 : index
    %c0_13 = arith.constant 0 : index
    %c0_14 = arith.constant 0 : index
    %17 = vector.load %arg3[%c2, %c0_13, %c0_14] : memref<9x16x15xf32, #tpu.memory_space<vmem>>, vector<1x16x15xf32>
    %18 = vector.shape_cast %17 : vector<1x16x15xf32> to vector<16x15xf32>
    %cst_15 = arith.constant dense<0.000000e+00> : vector<16x384xf32>
    %19 = tpu.matmul %18, %16, %cst_15 {dimension_numbers = #tpu.dot_dimension_numbers<[1], [0], [0], [1], [0, 0, 1, 1], [], []>} : vector<16x15xf32>, vector<15x384xf32>, vector<16x384xf32> -> vector<16x384xf32>
    %20 = arith.addf %15, %19 : vector<16x384xf32>
    %c1_i32 = arith.constant 1 : i32
    %21 = tpu.dynamic_rotate %2 by %c1_i32 dim 1 : vector<15x384xf32>, i32 -> vector<15x384xf32>
    %c3 = arith.constant 3 : index
    %c0_16 = arith.constant 0 : index
    %c0_17 = arith.constant 0 : index
    %22 = vector.load %arg3[%c3, %c0_16, %c0_17] : memref<9x16x15xf32, #tpu.memory_space<vmem>>, vector<1x16x15xf32>
    %23 = vector.shape_cast %22 : vector<1x16x15xf32> to vector<16x15xf32>
    %cst_18 = arith.constant dense<0.000000e+00> : vector<16x384xf32>
    %24 = tpu.matmul %23, %21, %cst_18 {dimension_numbers = #tpu.dot_dimension_numbers<[1], [0], [0], [1], [0, 0, 1, 1], [], []>} : vector<16x15xf32>, vector<15x384xf32>, vector<16x384xf32> -> vector<16x384xf32>
    %25 = arith.addf %20, %24 : vector<16x384xf32>
    %c383_i32 = arith.constant 383 : i32
    %26 = tpu.dynamic_rotate %2 by %c383_i32 dim 1 : vector<15x384xf32>, i32 -> vector<15x384xf32>
    %c5 = arith.constant 5 : index
    %c0_19 = arith.constant 0 : index
    %c0_20 = arith.constant 0 : index
    %27 = vector.load %arg3[%c5, %c0_19, %c0_20] : memref<9x16x15xf32, #tpu.memory_space<vmem>>, vector<1x16x15xf32>
    %28 = vector.shape_cast %27 : vector<1x16x15xf32> to vector<16x15xf32>
    %cst_21 = arith.constant dense<0.000000e+00> : vector<16x384xf32>
    %29 = tpu.matmul %28, %26, %cst_21 {dimension_numbers = #tpu.dot_dimension_numbers<[1], [0], [0], [1], [0, 0, 1, 1], [], []>} : vector<16x15xf32>, vector<15x384xf32>, vector<16x384xf32> -> vector<16x384xf32>
    %30 = arith.addf %25, %29 : vector<16x384xf32>
    %c367_i32 = arith.constant 367 : i32
    %31 = tpu.dynamic_rotate %2 by %c367_i32 dim 1 : vector<15x384xf32>, i32 -> vector<15x384xf32>
    %c6 = arith.constant 6 : index
    %c0_22 = arith.constant 0 : index
    %c0_23 = arith.constant 0 : index
    %32 = vector.load %arg3[%c6, %c0_22, %c0_23] : memref<9x16x15xf32, #tpu.memory_space<vmem>>, vector<1x16x15xf32>
    %33 = vector.shape_cast %32 : vector<1x16x15xf32> to vector<16x15xf32>
    %cst_24 = arith.constant dense<0.000000e+00> : vector<16x384xf32>
    %34 = tpu.matmul %33, %31, %cst_24 {dimension_numbers = #tpu.dot_dimension_numbers<[1], [0], [0], [1], [0, 0, 1, 1], [], []>} : vector<16x15xf32>, vector<15x384xf32>, vector<16x384xf32> -> vector<16x384xf32>
    %35 = arith.addf %30, %34 : vector<16x384xf32>
    %c366_i32 = arith.constant 366 : i32
    %36 = tpu.dynamic_rotate %2 by %c366_i32 dim 1 : vector<15x384xf32>, i32 -> vector<15x384xf32>
    %c7 = arith.constant 7 : index
    %c0_25 = arith.constant 0 : index
    %c0_26 = arith.constant 0 : index
    %37 = vector.load %arg3[%c7, %c0_25, %c0_26] : memref<9x16x15xf32, #tpu.memory_space<vmem>>, vector<1x16x15xf32>
    %38 = vector.shape_cast %37 : vector<1x16x15xf32> to vector<16x15xf32>
    %cst_27 = arith.constant dense<0.000000e+00> : vector<16x384xf32>
    %39 = tpu.matmul %38, %36, %cst_27 {dimension_numbers = #tpu.dot_dimension_numbers<[1], [0], [0], [1], [0, 0, 1, 1], [], []>} : vector<16x15xf32>, vector<15x384xf32>, vector<16x384xf32> -> vector<16x384xf32>
    %40 = arith.addf %35, %39 : vector<16x384xf32>
    %c365_i32 = arith.constant 365 : i32
    %41 = tpu.dynamic_rotate %2 by %c365_i32 dim 1 : vector<15x384xf32>, i32 -> vector<15x384xf32>
    %c8 = arith.constant 8 : index
    %c0_28 = arith.constant 0 : index
    %c0_29 = arith.constant 0 : index
    %42 = vector.load %arg3[%c8, %c0_28, %c0_29] : memref<9x16x15xf32, #tpu.memory_space<vmem>>, vector<1x16x15xf32>
    %43 = vector.shape_cast %42 : vector<1x16x15xf32> to vector<16x15xf32>
    %cst_30 = arith.constant dense<0.000000e+00> : vector<16x384xf32>
    %44 = tpu.matmul %43, %41, %cst_30 {dimension_numbers = #tpu.dot_dimension_numbers<[1], [0], [0], [1], [0, 0, 1, 1], [], []>} : vector<16x15xf32>, vector<15x384xf32>, vector<16x384xf32> -> vector<16x384xf32>
    %45 = arith.addf %40, %44 : vector<16x384xf32>
    %c0_31 = arith.constant 0 : index
    %c0_32 = arith.constant 0 : index
    %46 = vector.load %arg4[%c0_31, %c0_32] : memref<16x1xf32, #tpu.memory_space<vmem>>, vector<16x1xf32>
    %47 = vector.broadcast %46 : vector<16x1xf32> to vector<16x384xf32>
    %48 = arith.addf %45, %47 : vector<16x384xf32>
    %cst_33 = arith.constant 0.000000e+00 : f32
    %49 = vector.broadcast %cst_33 : f32 to vector<16x384xf32>
    %50 = arith.cmpf oge, %48, %49 : vector<16x384xf32>
    %cst_34 = arith.constant 1.000000e-01 : f32
    %51 = vector.broadcast %cst_34 : f32 to vector<16x384xf32>
    %52 = arith.mulf %51, %48 : vector<16x384xf32>
    %53 = arith.select %50, %48, %52 : vector<16x384xi1>, vector<16x384xf32>
    %54 = vector.broadcast %0 : vector<1x384xf32> to vector<16x384xf32>
    %55 = arith.mulf %53, %54 : vector<16x384xf32>
    %c4_35 = arith.constant 4 : index
    %c0_36 = arith.constant 0 : index
    %c0_37 = arith.constant 0 : index
    %56 = vector.load %arg5[%c4_35, %c0_36, %c0_37] : memref<9x16x16xf32, #tpu.memory_space<vmem>>, vector<1x16x16xf32>
    %57 = vector.shape_cast %56 : vector<1x16x16xf32> to vector<16x16xf32>
    %cst_38 = arith.constant dense<0.000000e+00> : vector<16x384xf32>
    %58 = tpu.matmul %57, %55, %cst_38 {dimension_numbers = #tpu.dot_dimension_numbers<[1], [0], [0], [1], [0, 0, 1, 1], [], []>} : vector<16x16xf32>, vector<16x384xf32>, vector<16x384xf32> -> vector<16x384xf32>
    %c19_i32_39 = arith.constant 19 : i32
    %59 = tpu.dynamic_rotate %55 by %c19_i32_39 dim 1 : vector<16x384xf32>, i32 -> vector<16x384xf32>
    %c0_40 = arith.constant 0 : index
    %c0_41 = arith.constant 0 : index
    %c0_42 = arith.constant 0 : index
    %60 = vector.load %arg5[%c0_40, %c0_41, %c0_42] : memref<9x16x16xf32, #tpu.memory_space<vmem>>, vector<1x16x16xf32>
    %61 = vector.shape_cast %60 : vector<1x16x16xf32> to vector<16x16xf32>
    %cst_43 = arith.constant dense<0.000000e+00> : vector<16x384xf32>
    %62 = tpu.matmul %61, %59, %cst_43 {dimension_numbers = #tpu.dot_dimension_numbers<[1], [0], [0], [1], [0, 0, 1, 1], [], []>} : vector<16x16xf32>, vector<16x384xf32>, vector<16x384xf32> -> vector<16x384xf32>
    %63 = arith.addf %58, %62 : vector<16x384xf32>
    %c18_i32_44 = arith.constant 18 : i32
    %64 = tpu.dynamic_rotate %55 by %c18_i32_44 dim 1 : vector<16x384xf32>, i32 -> vector<16x384xf32>
    %c1_45 = arith.constant 1 : index
    %c0_46 = arith.constant 0 : index
    %c0_47 = arith.constant 0 : index
    %65 = vector.load %arg5[%c1_45, %c0_46, %c0_47] : memref<9x16x16xf32, #tpu.memory_space<vmem>>, vector<1x16x16xf32>
    %66 = vector.shape_cast %65 : vector<1x16x16xf32> to vector<16x16xf32>
    %cst_48 = arith.constant dense<0.000000e+00> : vector<16x384xf32>
    %67 = tpu.matmul %66, %64, %cst_48 {dimension_numbers = #tpu.dot_dimension_numbers<[1], [0], [0], [1], [0, 0, 1, 1], [], []>} : vector<16x16xf32>, vector<16x384xf32>, vector<16x384xf32> -> vector<16x384xf32>
    %68 = arith.addf %63, %67 : vector<16x384xf32>
    %c17_i32_49 = arith.constant 17 : i32
    %69 = tpu.dynamic_rotate %55 by %c17_i32_49 dim 1 : vector<16x384xf32>, i32 -> vector<16x384xf32>
    %c2_50 = arith.constant 2 : index
    %c0_51 = arith.constant 0 : index
    %c0_52 = arith.constant 0 : index
    %70 = vector.load %arg5[%c2_50, %c0_51, %c0_52] : memref<9x16x16xf32, #tpu.memory_space<vmem>>, vector<1x16x16xf32>
    %71 = vector.shape_cast %70 : vector<1x16x16xf32> to vector<16x16xf32>
    %cst_53 = arith.constant dense<0.000000e+00> : vector<16x384xf32>
    %72 = tpu.matmul %71, %69, %cst_53 {dimension_numbers = #tpu.dot_dimension_numbers<[1], [0], [0], [1], [0, 0, 1, 1], [], []>} : vector<16x16xf32>, vector<16x384xf32>, vector<16x384xf32> -> vector<16x384xf32>
    %73 = arith.addf %68, %72 : vector<16x384xf32>
    %c1_i32_54 = arith.constant 1 : i32
    %74 = tpu.dynamic_rotate %55 by %c1_i32_54 dim 1 : vector<16x384xf32>, i32 -> vector<16x384xf32>
    %c3_55 = arith.constant 3 : index
    %c0_56 = arith.constant 0 : index
    %c0_57 = arith.constant 0 : index
    %75 = vector.load %arg5[%c3_55, %c0_56, %c0_57] : memref<9x16x16xf32, #tpu.memory_space<vmem>>, vector<1x16x16xf32>
    %76 = vector.shape_cast %75 : vector<1x16x16xf32> to vector<16x16xf32>
    %cst_58 = arith.constant dense<0.000000e+00> : vector<16x384xf32>
    %77 = tpu.matmul %76, %74, %cst_58 {dimension_numbers = #tpu.dot_dimension_numbers<[1], [0], [0], [1], [0, 0, 1, 1], [], []>} : vector<16x16xf32>, vector<16x384xf32>, vector<16x384xf32> -> vector<16x384xf32>
    %78 = arith.addf %73, %77 : vector<16x384xf32>
    %c383_i32_59 = arith.constant 383 : i32
    %79 = tpu.dynamic_rotate %55 by %c383_i32_59 dim 1 : vector<16x384xf32>, i32 -> vector<16x384xf32>
    %c5_60 = arith.constant 5 : index
    %c0_61 = arith.constant 0 : index
    %c0_62 = arith.constant 0 : index
    %80 = vector.load %arg5[%c5_60, %c0_61, %c0_62] : memref<9x16x16xf32, #tpu.memory_space<vmem>>, vector<1x16x16xf32>
    %81 = vector.shape_cast %80 : vector<1x16x16xf32> to vector<16x16xf32>
    %cst_63 = arith.constant dense<0.000000e+00> : vector<16x384xf32>
    %82 = tpu.matmul %81, %79, %cst_63 {dimension_numbers = #tpu.dot_dimension_numbers<[1], [0], [0], [1], [0, 0, 1, 1], [], []>} : vector<16x16xf32>, vector<16x384xf32>, vector<16x384xf32> -> vector<16x384xf32>
    %83 = arith.addf %78, %82 : vector<16x384xf32>
    %c367_i32_64 = arith.constant 367 : i32
    %84 = tpu.dynamic_rotate %55 by %c367_i32_64 dim 1 : vector<16x384xf32>, i32 -> vector<16x384xf32>
    %c6_65 = arith.constant 6 : index
    %c0_66 = arith.constant 0 : index
    %c0_67 = arith.constant 0 : index
    %85 = vector.load %arg5[%c6_65, %c0_66, %c0_67] : memref<9x16x16xf32, #tpu.memory_space<vmem>>, vector<1x16x16xf32>
    %86 = vector.shape_cast %85 : vector<1x16x16xf32> to vector<16x16xf32>
    %cst_68 = arith.constant dense<0.000000e+00> : vector<16x384xf32>
    %87 = tpu.matmul %86, %84, %cst_68 {dimension_numbers = #tpu.dot_dimension_numbers<[1], [0], [0], [1], [0, 0, 1, 1], [], []>} : vector<16x16xf32>, vector<16x384xf32>, vector<16x384xf32> -> vector<16x384xf32>
    %88 = arith.addf %83, %87 : vector<16x384xf32>
    %c366_i32_69 = arith.constant 366 : i32
    %89 = tpu.dynamic_rotate %55 by %c366_i32_69 dim 1 : vector<16x384xf32>, i32 -> vector<16x384xf32>
    %c7_70 = arith.constant 7 : index
    %c0_71 = arith.constant 0 : index
    %c0_72 = arith.constant 0 : index
    %90 = vector.load %arg5[%c7_70, %c0_71, %c0_72] : memref<9x16x16xf32, #tpu.memory_space<vmem>>, vector<1x16x16xf32>
    %91 = vector.shape_cast %90 : vector<1x16x16xf32> to vector<16x16xf32>
    %cst_73 = arith.constant dense<0.000000e+00> : vector<16x384xf32>
    %92 = tpu.matmul %91, %89, %cst_73 {dimension_numbers = #tpu.dot_dimension_numbers<[1], [0], [0], [1], [0, 0, 1, 1], [], []>} : vector<16x16xf32>, vector<16x384xf32>, vector<16x384xf32> -> vector<16x384xf32>
    %93 = arith.addf %88, %92 : vector<16x384xf32>
    %c365_i32_74 = arith.constant 365 : i32
    %94 = tpu.dynamic_rotate %55 by %c365_i32_74 dim 1 : vector<16x384xf32>, i32 -> vector<16x384xf32>
    %c8_75 = arith.constant 8 : index
    %c0_76 = arith.constant 0 : index
    %c0_77 = arith.constant 0 : index
    %95 = vector.load %arg5[%c8_75, %c0_76, %c0_77] : memref<9x16x16xf32, #tpu.memory_space<vmem>>, vector<1x16x16xf32>
    %96 = vector.shape_cast %95 : vector<1x16x16xf32> to vector<16x16xf32>
    %cst_78 = arith.constant dense<0.000000e+00> : vector<16x384xf32>
    %97 = tpu.matmul %96, %94, %cst_78 {dimension_numbers = #tpu.dot_dimension_numbers<[1], [0], [0], [1], [0, 0, 1, 1], [], []>} : vector<16x16xf32>, vector<16x384xf32>, vector<16x384xf32> -> vector<16x384xf32>
    %98 = arith.addf %93, %97 : vector<16x384xf32>
    %c0_79 = arith.constant 0 : index
    %c0_80 = arith.constant 0 : index
    %99 = vector.load %arg6[%c0_79, %c0_80] : memref<16x1xf32, #tpu.memory_space<vmem>>, vector<16x1xf32>
    %100 = vector.broadcast %99 : vector<16x1xf32> to vector<16x384xf32>
    %101 = arith.addf %98, %100 : vector<16x384xf32>
    %cst_81 = arith.constant 0.000000e+00 : f32
    %102 = vector.broadcast %cst_81 : f32 to vector<16x384xf32>
    %103 = arith.cmpf oge, %101, %102 : vector<16x384xf32>
    %cst_82 = arith.constant 1.000000e-01 : f32
    %104 = vector.broadcast %cst_82 : f32 to vector<16x384xf32>
    %105 = arith.mulf %104, %101 : vector<16x384xf32>
    %106 = arith.select %103, %101, %105 : vector<16x384xi1>, vector<16x384xf32>
    %107 = vector.broadcast %0 : vector<1x384xf32> to vector<16x384xf32>
    %108 = arith.mulf %106, %107 : vector<16x384xf32>
    %109 = vector.extract_strided_slice %2 {offsets = [4, 0], sizes = [8, 384], strides = [1, 1]} : vector<15x384xf32> to vector<8x384xf32>
    %110 = vector.extract_strided_slice %108 {offsets = [0, 0], sizes = [8, 384], strides = [1, 1]} : vector<16x384xf32> to vector<8x384xf32>
    %111 = arith.negf %110 : vector<8x384xf32>
    %112 = math.exp %111 : vector<8x384xf32>
    %cst_83 = arith.constant 1.000000e+00 : f32
    %113 = vector.broadcast %cst_83 : f32 to vector<8x384xf32>
    %114 = arith.addf %113, %112 : vector<8x384xf32>
    %115 = arith.divf %113, %114 : vector<8x384xf32>
    %cst_84 = arith.constant 2.000000e+00 : f32
    %116 = vector.broadcast %cst_84 : f32 to vector<8x384xf32>
    %117 = arith.mulf %116, %115 : vector<8x384xf32>
    %118 = vector.extract_strided_slice %108 {offsets = [8, 0], sizes = [8, 384], strides = [1, 1]} : vector<16x384xf32> to vector<8x384xf32>
    %119 = arith.mulf %117, %109 : vector<8x384xf32>
    %120 = arith.addf %119, %118 : vector<8x384xf32>
    %c0_85 = arith.constant 0 : index
    %c0_86 = arith.constant 0 : index
    %121 = vector.load %arg7[%c0_85, %c0_86] : memref<32x8xf32, #tpu.memory_space<vmem>>, vector<32x8xf32>
    %cst_87 = arith.constant dense<0.000000e+00> : vector<32x384xf32>
    %122 = tpu.matmul %121, %120, %cst_87 {dimension_numbers = #tpu.dot_dimension_numbers<[1], [0], [0], [1], [0, 0, 1, 1], [], []>} : vector<32x8xf32>, vector<8x384xf32>, vector<32x384xf32> -> vector<32x384xf32>
    %c0_88 = arith.constant 0 : index
    %c0_89 = arith.constant 0 : index
    %123 = vector.load %arg8[%c0_88, %c0_89] : memref<32x1xf32, #tpu.memory_space<vmem>>, vector<32x1xf32>
    %124 = vector.broadcast %123 : vector<32x1xf32> to vector<32x384xf32>
    %125 = arith.addf %122, %124 : vector<32x384xf32>
    %cst_90 = arith.constant 0.000000e+00 : f32
    %126 = vector.broadcast %cst_90 : f32 to vector<32x384xf32>
    %127 = arith.cmpf oge, %125, %126 : vector<32x384xf32>
    %cst_91 = arith.constant 1.000000e-01 : f32
    %128 = vector.broadcast %cst_91 : f32 to vector<32x384xf32>
    %129 = arith.mulf %128, %125 : vector<32x384xf32>
    %130 = arith.select %127, %125, %129 : vector<32x384xi1>, vector<32x384xf32>
    %131 = vector.broadcast %0 : vector<1x384xf32> to vector<32x384xf32>
    %132 = arith.mulf %130, %131 : vector<32x384xf32>
    %c0_92 = arith.constant 0 : index
    %c0_93 = arith.constant 0 : index
    %c0_94 = arith.constant 0 : index
    %133 = vector.load %arg11[%c0_92, %c0_93, %c0_94] : memref<1x32x384xf32, #tpu.memory_space<vmem>>, vector<1x32x384xf32>
    %134 = vector.shape_cast %133 : vector<1x32x384xf32> to vector<32x384xf32>
    %135 = vector.shape_cast %132 : vector<32x384xf32> to vector<1x32x384xf32>
    tpu.vector_store %arg11[%c0_92, %c0_93, %c0_94], %135 {strides = array<i32>} : memref<1x32x384xf32, #tpu.memory_space<vmem>>, vector<1x32x384xf32>,
    %c4_95 = arith.constant 4 : index
    %c0_96 = arith.constant 0 : index
    %c0_97 = arith.constant 0 : index
    %136 = vector.load %arg9[%c4_95, %c0_96, %c0_97] : memref<9x2x32xf32, #tpu.memory_space<vmem>>, vector<1x2x32xf32>
    %137 = vector.shape_cast %136 : vector<1x2x32xf32> to vector<2x32xf32>
    %cst_98 = arith.constant dense<0.000000e+00> : vector<2x384xf32>
    %138 = tpu.matmul %137, %132, %cst_98 {dimension_numbers = #tpu.dot_dimension_numbers<[1], [0], [0], [1], [0, 0, 1, 1], [], []>} : vector<2x32xf32>, vector<32x384xf32>, vector<2x384xf32> -> vector<2x384xf32>
    %c19_i32_99 = arith.constant 19 : i32
    %139 = tpu.dynamic_rotate %132 by %c19_i32_99 dim 1 : vector<32x384xf32>, i32 -> vector<32x384xf32>
    %c0_100 = arith.constant 0 : index
    %c0_101 = arith.constant 0 : index
    %c0_102 = arith.constant 0 : index
    %140 = vector.load %arg9[%c0_100, %c0_101, %c0_102] : memref<9x2x32xf32, #tpu.memory_space<vmem>>, vector<1x2x32xf32>
    %141 = vector.shape_cast %140 : vector<1x2x32xf32> to vector<2x32xf32>
    %cst_103 = arith.constant dense<0.000000e+00> : vector<2x384xf32>
    %142 = tpu.matmul %141, %139, %cst_103 {dimension_numbers = #tpu.dot_dimension_numbers<[1], [0], [0], [1], [0, 0, 1, 1], [], []>} : vector<2x32xf32>, vector<32x384xf32>, vector<2x384xf32> -> vector<2x384xf32>
    %143 = arith.addf %138, %142 : vector<2x384xf32>
    %c18_i32_104 = arith.constant 18 : i32
    %144 = tpu.dynamic_rotate %132 by %c18_i32_104 dim 1 : vector<32x384xf32>, i32 -> vector<32x384xf32>
    %c1_105 = arith.constant 1 : index
    %c0_106 = arith.constant 0 : index
    %c0_107 = arith.constant 0 : index
    %145 = vector.load %arg9[%c1_105, %c0_106, %c0_107] : memref<9x2x32xf32, #tpu.memory_space<vmem>>, vector<1x2x32xf32>
    %146 = vector.shape_cast %145 : vector<1x2x32xf32> to vector<2x32xf32>
    %cst_108 = arith.constant dense<0.000000e+00> : vector<2x384xf32>
    %147 = tpu.matmul %146, %144, %cst_108 {dimension_numbers = #tpu.dot_dimension_numbers<[1], [0], [0], [1], [0, 0, 1, 1], [], []>} : vector<2x32xf32>, vector<32x384xf32>, vector<2x384xf32> -> vector<2x384xf32>
    %148 = arith.addf %143, %147 : vector<2x384xf32>
    %c17_i32_109 = arith.constant 17 : i32
    %149 = tpu.dynamic_rotate %132 by %c17_i32_109 dim 1 : vector<32x384xf32>, i32 -> vector<32x384xf32>
    %c2_110 = arith.constant 2 : index
    %c0_111 = arith.constant 0 : index
    %c0_112 = arith.constant 0 : index
    %150 = vector.load %arg9[%c2_110, %c0_111, %c0_112] : memref<9x2x32xf32, #tpu.memory_space<vmem>>, vector<1x2x32xf32>
    %151 = vector.shape_cast %150 : vector<1x2x32xf32> to vector<2x32xf32>
    %cst_113 = arith.constant dense<0.000000e+00> : vector<2x384xf32>
    %152 = tpu.matmul %151, %149, %cst_113 {dimension_numbers = #tpu.dot_dimension_numbers<[1], [0], [0], [1], [0, 0, 1, 1], [], []>} : vector<2x32xf32>, vector<32x384xf32>, vector<2x384xf32> -> vector<2x384xf32>
    %153 = arith.addf %148, %152 : vector<2x384xf32>
    %c1_i32_114 = arith.constant 1 : i32
    %154 = tpu.dynamic_rotate %132 by %c1_i32_114 dim 1 : vector<32x384xf32>, i32 -> vector<32x384xf32>
    %c3_115 = arith.constant 3 : index
    %c0_116 = arith.constant 0 : index
    %c0_117 = arith.constant 0 : index
    %155 = vector.load %arg9[%c3_115, %c0_116, %c0_117] : memref<9x2x32xf32, #tpu.memory_space<vmem>>, vector<1x2x32xf32>
    %156 = vector.shape_cast %155 : vector<1x2x32xf32> to vector<2x32xf32>
    %cst_118 = arith.constant dense<0.000000e+00> : vector<2x384xf32>
    %157 = tpu.matmul %156, %154, %cst_118 {dimension_numbers = #tpu.dot_dimension_numbers<[1], [0], [0], [1], [0, 0, 1, 1], [], []>} : vector<2x32xf32>, vector<32x384xf32>, vector<2x384xf32> -> vector<2x384xf32>
    %158 = arith.addf %153, %157 : vector<2x384xf32>
    %c383_i32_119 = arith.constant 383 : i32
    %159 = tpu.dynamic_rotate %132 by %c383_i32_119 dim 1 : vector<32x384xf32>, i32 -> vector<32x384xf32>
    %c5_120 = arith.constant 5 : index
    %c0_121 = arith.constant 0 : index
    %c0_122 = arith.constant 0 : index
    %160 = vector.load %arg9[%c5_120, %c0_121, %c0_122] : memref<9x2x32xf32, #tpu.memory_space<vmem>>, vector<1x2x32xf32>
    %161 = vector.shape_cast %160 : vector<1x2x32xf32> to vector<2x32xf32>
    %cst_123 = arith.constant dense<0.000000e+00> : vector<2x384xf32>
    %162 = tpu.matmul %161, %159, %cst_123 {dimension_numbers = #tpu.dot_dimension_numbers<[1], [0], [0], [1], [0, 0, 1, 1], [], []>} : vector<2x32xf32>, vector<32x384xf32>, vector<2x384xf32> -> vector<2x384xf32>
    %163 = arith.addf %158, %162 : vector<2x384xf32>
    %c367_i32_124 = arith.constant 367 : i32
    %164 = tpu.dynamic_rotate %132 by %c367_i32_124 dim 1 : vector<32x384xf32>, i32 -> vector<32x384xf32>
    %c6_125 = arith.constant 6 : index
    %c0_126 = arith.constant 0 : index
    %c0_127 = arith.constant 0 : index
    %165 = vector.load %arg9[%c6_125, %c0_126, %c0_127] : memref<9x2x32xf32, #tpu.memory_space<vmem>>, vector<1x2x32xf32>
    %166 = vector.shape_cast %165 : vector<1x2x32xf32> to vector<2x32xf32>
    %cst_128 = arith.constant dense<0.000000e+00> : vector<2x384xf32>
    %167 = tpu.matmul %166, %164, %cst_128 {dimension_numbers = #tpu.dot_dimension_numbers<[1], [0], [0], [1], [0, 0, 1, 1], [], []>} : vector<2x32xf32>, vector<32x384xf32>, vector<2x384xf32> -> vector<2x384xf32>
    %168 = arith.addf %163, %167 : vector<2x384xf32>
    %c366_i32_129 = arith.constant 366 : i32
    %169 = tpu.dynamic_rotate %132 by %c366_i32_129 dim 1 : vector<32x384xf32>, i32 -> vector<32x384xf32>
    %c7_130 = arith.constant 7 : index
    %c0_131 = arith.constant 0 : index
    %c0_132 = arith.constant 0 : index
    %170 = vector.load %arg9[%c7_130, %c0_131, %c0_132] : memref<9x2x32xf32, #tpu.memory_space<vmem>>, vector<1x2x32xf32>
    %171 = vector.shape_cast %170 : vector<1x2x32xf32> to vector<2x32xf32>
    %cst_133 = arith.constant dense<0.000000e+00> : vector<2x384xf32>
    %172 = tpu.matmul %171, %169, %cst_133 {dimension_numbers = #tpu.dot_dimension_numbers<[1], [0], [0], [1], [0, 0, 1, 1], [], []>} : vector<2x32xf32>, vector<32x384xf32>, vector<2x384xf32> -> vector<2x384xf32>
    %173 = arith.addf %168, %172 : vector<2x384xf32>
    %c365_i32_134 = arith.constant 365 : i32
    %174 = tpu.dynamic_rotate %132 by %c365_i32_134 dim 1 : vector<32x384xf32>, i32 -> vector<32x384xf32>
    %c8_135 = arith.constant 8 : index
    %c0_136 = arith.constant 0 : index
    %c0_137 = arith.constant 0 : index
    %175 = vector.load %arg9[%c8_135, %c0_136, %c0_137] : memref<9x2x32xf32, #tpu.memory_space<vmem>>, vector<1x2x32xf32>
    %176 = vector.shape_cast %175 : vector<1x2x32xf32> to vector<2x32xf32>
    %cst_138 = arith.constant dense<0.000000e+00> : vector<2x384xf32>
    %177 = tpu.matmul %176, %174, %cst_138 {dimension_numbers = #tpu.dot_dimension_numbers<[1], [0], [0], [1], [0, 0, 1, 1], [], []>} : vector<2x32xf32>, vector<32x384xf32>, vector<2x384xf32> -> vector<2x384xf32>
    %178 = arith.addf %173, %177 : vector<2x384xf32>
    %c0_139 = arith.constant 0 : index
    %c0_140 = arith.constant 0 : index
    %179 = vector.load %arg10[%c0_139, %c0_140] : memref<2x1xf32, #tpu.memory_space<vmem>>, vector<2x1xf32>
    %180 = vector.broadcast %179 : vector<2x1xf32> to vector<2x384xf32>
    %181 = arith.addf %178, %180 : vector<2x384xf32>
    %182 = vector.broadcast %0 : vector<1x384xf32> to vector<2x384xf32>
    %183 = arith.mulf %181, %182 : vector<2x384xf32>
    %c0_141 = arith.constant 0 : index
    %c0_142 = arith.constant 0 : index
    %c0_143 = arith.constant 0 : index
    %184 = vector.load %arg12[%c0_141, %c0_142, %c0_143] : memref<1x2x384xf32, #tpu.memory_space<vmem>>, vector<1x2x384xf32>
    %185 = vector.shape_cast %184 : vector<1x2x384xf32> to vector<2x384xf32>
    %186 = vector.shape_cast %183 : vector<2x384xf32> to vector<1x2x384xf32>
    tpu.vector_store %arg12[%c0_141, %c0_142, %c0_143], %186 {strides = array<i32>} : memref<1x2x384xf32, #tpu.memory_space<vmem>>, vector<1x2x384xf32>,
    return
  }
  func.func @transform_0(%arg0: i32) -> (i32, i32) {
    %c0_i32 = arith.constant 0 : i32
    %c0_i32_0 = arith.constant 0 : i32
    %c0_i32_1 = arith.constant 0 : i32
    return %c0_i32, %c0_i32_0 : i32, i32
  }
  func.func @transform_1(%arg0: i32) -> (i32, i32, i32) {
    %c0_i32 = arith.constant 0 : i32
    %c0_i32_0 = arith.constant 0 : i32
    %c0_i32_1 = arith.constant 0 : i32
    return %arg0, %c0_i32, %c0_i32_0 : i32, i32, i32
  }
  func.func @transform_2(%arg0: i32) -> (i32, i32, i32) {
    %c0_i32 = arith.constant 0 : i32
    %c0_i32_0 = arith.constant 0 : i32
    %c0_i32_1 = arith.constant 0 : i32
    %c0_i32_2 = arith.constant 0 : i32
    return %c0_i32, %c0_i32_0, %c0_i32_1 : i32, i32, i32
  }
  func.func @transform_3(%arg0: i32) -> (i32, i32) {
    %c0_i32 = arith.constant 0 : i32
    %c0_i32_0 = arith.constant 0 : i32
    %c0_i32_1 = arith.constant 0 : i32
    return %c0_i32, %c0_i32_0 : i32, i32
  }
  func.func @transform_4(%arg0: i32) -> (i32, i32, i32) {
    %c0_i32 = arith.constant 0 : i32
    %c0_i32_0 = arith.constant 0 : i32
    %c0_i32_1 = arith.constant 0 : i32
    %c0_i32_2 = arith.constant 0 : i32
    return %c0_i32, %c0_i32_0, %c0_i32_1 : i32, i32, i32
  }
  func.func @transform_5(%arg0: i32) -> (i32, i32) {
    %c0_i32 = arith.constant 0 : i32
    %c0_i32_0 = arith.constant 0 : i32
    %c0_i32_1 = arith.constant 0 : i32
    return %c0_i32, %c0_i32_0 : i32, i32
  }
  func.func @transform_6(%arg0: i32) -> (i32, i32) {
    %c0_i32 = arith.constant 0 : i32
    %c0_i32_0 = arith.constant 0 : i32
    %c0_i32_1 = arith.constant 0 : i32
    return %c0_i32, %c0_i32_0 : i32, i32
  }
  func.func @transform_7(%arg0: i32) -> (i32, i32) {
    %c0_i32 = arith.constant 0 : i32
    %c0_i32_0 = arith.constant 0 : i32
    %c0_i32_1 = arith.constant 0 : i32
    return %c0_i32, %c0_i32_0 : i32, i32
  }
  func.func @transform_8(%arg0: i32) -> (i32, i32, i32) {
    %c0_i32 = arith.constant 0 : i32
    %c0_i32_0 = arith.constant 0 : i32
    %c0_i32_1 = arith.constant 0 : i32
    %c0_i32_2 = arith.constant 0 : i32
    return %c0_i32, %c0_i32_0, %c0_i32_1 : i32, i32, i32
  }
  func.func @transform_9(%arg0: i32) -> (i32, i32) {
    %c0_i32 = arith.constant 0 : i32
    %c0_i32_0 = arith.constant 0 : i32
    %c0_i32_1 = arith.constant 0 : i32
    return %c0_i32, %c0_i32_0 : i32, i32
  }
  func.func @transform_10(%arg0: i32) -> (i32, i32, i32) {
    %c0_i32 = arith.constant 0 : i32
    %c0_i32_0 = arith.constant 0 : i32
    %c0_i32_1 = arith.constant 0 : i32
    return %arg0, %c0_i32, %c0_i32_0 : i32, i32, i32
  }
  func.func @transform_11(%arg0: i32) -> (i32, i32, i32) {
    %c0_i32 = arith.constant 0 : i32
    %c0_i32_0 = arith.constant 0 : i32
    %c0_i32_1 = arith.constant 0 : i32
    return %arg0, %c0_i32, %c0_i32_0 : i32, i32, i32
  }
}

</mosaic_0001>

<bundles_post_ra>
// kernel: flow_estimator_2d.1
= control target key start
LH: loop header
LB: loop body
LE: loop exit
PB: predicated region body
PF: predicated region fallthrough
CT: control target
= control target key end

     0   :  { %s7489_s17 = smov 0   ;;  %s8849_s0 = inlined_call_operand.vmem [shape: f32[1,384], index: 0, kind: input, shape index: {}]   ;;  %s8850_s1 = inlined_call_operand.vmem [shape: f32[2,15,384], index: 1, kind: input, shape index: {}]   ;;  %s8851_s2 = inlined_call_operand.vmem [shape: f32[9,16,15], index: 2, kind: input, shape index: {}]   ;;  %s8852_s3 = inlined_call_operand.vmem [shape: f32[16,1], index: 3, kind: input, shape index: {}]   ;;  %s8853_s4 = inlined_call_operand.vmem [shape: f32[9,16,16], index: 4, kind: input, shape index: {}]   ;;  %s8854_s5 = inlined_call_operand.vmem [shape: f32[16,1], index: 5, kind: input, shape index: {}]   ;;  %s8855_s6 = inlined_call_operand.vmem [shape: f32[32,8], index: 6, kind: input, shape index: {}]   ;;  %s8856_s7 = inlined_call_operand.vmem [shape: f32[32,1], index: 7, kind: input, shape index: {}]   ;;  %s8857_s8 = inlined_call_operand.vmem [shape: f32[9,2,32], index: 8, kind: input, shape index: {}]   ;;  %s8858_s9 = inlined_call_operand.vmem [shape: f32[2,1], index: 9, kind: input, shape index: {}]   ;;  %s8859_s10 = inlined_call_operand.vmem [shape: f32[2,32,384], index: 10, kind: output, shape index: {0}]   ;;  %s8860_s11 = inlined_call_operand.vmem [shape: f32[2,2,384], index: 11, kind: output, shape index: {1}]  }
   0x1 LB: > { %s5931_s18 = sadd.s32 4294967295, %s7413_s17   ;;  %p5935_p0 = scmp.ge.s32.totalorder %s7413_s17, 1  ;;  %s7413_s17 = sphi %s7489_s17, %s22_s17  }
   0x2   : > { %p340_p1 = scmp.lt.s32.totalorder %s7413_s17, 3 }
   0x4   : > { %p341_p2 = pnand %p5935_p0, %p340_p1 }
   0x5   : > { %p385_p3 = scmp.lt.s32.totalorder (!%p341_p2), %s5931_s18, 1  ;;  %s7415_s23 = smov (!%p341_p2), 19   ;;  %v7534_v9 = vld [vmem:[%s8851_s2] sm:$0xff] (!%p341_p2)  ;;  %vm433_vm0 = vcmask (!%p341_p2), 121856   ;;  %v7417_v10 = vmov (!%p341_p2), 0.0   ;;  %v2135_v11 = vld [vmem:[%s8852_s3 + $0x8] sm:$0xff] (!%p341_p2)  ;;  %v422_v14 = vlaneseq (!%p341_p2) }
   0x6   : > { %344 = sbr.rel (%p341_p2) target bundleno = 1594 (0x63a), region = 60  ;;  %s7416_s26 = smov (!%p341_p2), 18   ;;  %514 = vmatprep.mubr.f32.mxu0 (!%p341_p2), %v7417_v10  ;;  %6235 = vmatprep.mubr.msk.f32.mxu1 (!%p341_p2), %vm433_vm0, %v7534_v9  ;;  %v2134_v12 = vld [vmem:[%s8852_s3] sm:$0xff] (!%p341_p2)  ;;  %v7424_v13 = vmov (!%p341_p2), 0   ;;  %vm440_vm2 = vcmask (!%p341_p2), 1046528   ;;  %vm7425_vm4 = vmmov (!%p341_p2), 1  }
   0x7   : > { %s7418_s27 = smov (!%p341_p2), 17   ;;  %s7419_s28 = smov (!%p341_p2), 1   ;;  %7028 = vset.pattern.permute.xlu1 (!%p341_p2), %v7424_v13  ;;  %7027 = vset.pattern.permute.xlu0 (!%p341_p2), %v7424_v13  ;;  %v7568_v16 = vand.u32 (!%p341_p2), 127, %v422_v14  ;;  %vm7580_vm5 = vmpackc.low (!%p341_p2), %vm440_vm2, %vm7425_vm4  ;;  %v432_v47 = vld [vmem:[%s8851_s2 + $0x8] sm:$0xff] (!%p341_p2)  ;;  %v5939_v54 = vld [vmem:[%s8851_s2 + $0x40] sm:$0xff] (!%p341_p2)  ;;  %v7875_v32 = vshrl.u32 (!%p341_p2), %v422_v14, 7 }
   0x8   : > { %s7420_s29 = smov (!%p341_p2), 127   ;;  %s7421_s30 = smov (!%p341_p2), 111   ;;  %vm2215_vm4 = vcmask (!%p341_p2), 130048  }
   0x9   : > { %s8863_s12 = smov (!%p341_p2), 110   ;;  %s8861_s13 = smov (!%p341_p2), 109   ;;  %vm424_vm1 = vcmp.lt.s32.totalorder (!%p341_p2), %v7568_v16, 19  ;;  %vm781_vm3 = vcmp.lt.s32.totalorder (!%p341_p2), %v7568_v16, 18  ;;  %vm976_vm6 = vcmp.lt.s32.totalorder (!%p341_p2), %v7568_v16, 17  ;;  %vm1171_vm7 = vcmp.lt.s32.totalorder (!%p341_p2), %v7568_v16, 1 }
   0xa   : > { %vm1366_vm8 = vcmp.lt.s32.totalorder (!%p341_p2), %v7568_v16, 127  ;;  %vm1561_vm9 = vcmp.lt.s32.totalorder (!%p341_p2), %v7568_v16, 111  ;;  %vm1756_vm10 = vcmp.lt.s32.totalorder (!%p341_p2), %v7568_v16, 110  ;;  %vm1951_vm11 = vcmp.lt.s32.totalorder (!%p341_p2), %v7568_v16, 109 }
   0xd   : > { %s8870_s18 = smov (!%p385_p3, %s5931_s18), 1 }
   0xe   : > { %s6882_s19 = smul.u32 48, %s8870_s18 }
  0x10   : > { %s7503_s22 = scalar_lea.vmem %s8850_s1, %s6882_s19  ;;  %s6883_s19 = smul.u32 96, %s8870_s18 }
  0x11   : > { %v7506_v0 = vld [vmem:[%s7503_s22 + $0x10] sm:$0xff]  ;;  %v7509_v1 = vld [vmem:[%s7503_s22 + $0x28] sm:$0x7f]  ;;  %v7512_v2 = vld [vmem:[%s7503_s22] sm:$0xff] }
  0x12   : > { %v6917_v3 = vpack.i.bf16 %v7509_v1, %v7506_v0  ;;  %v7517_v4 = vld [vmem:[%s7503_s22 + $0x18] sm:$0x7f]  ;;  %v7520_v5 = vld [vmem:[%s7503_s22 + $0x8] sm:$0xff]  ;;  %v7523_v6 = vld [vmem:[%s7503_s22 + $0x20] sm:$0x7f]  ;;  %v6482_v40 = vpack.c.bf16 %v7509_v1, %v7506_v0  ;;  %s8213_s24 = scalar_lea.vmem %s8859_s10, %s6883_s19 }
  0x13   : > { %v6907_v7 = vpack.i.bf16 %v7517_v4, %v7512_v2  ;;  %v6912_v8 = vpack.i.bf16 %v7523_v6, %v7520_v5  ;;  %v6476_v39 = vpack.c.bf16 %v7523_v6, %v7520_v5  ;;  %v6479_v46 = vpack.c.bf16 %v7517_v4, %v7512_v2  ;;  %v5940_v6 = vld [vmem:[%s8851_s2 + $0x48] sm:$0xff] }
  0x14   : > { %6918 = vrot.lane.b32.xlu1 %v6917_v3, %s7415_s23 }
  0x15   : > { %6908 = vrot.lane.b32.xlu0 %v6907_v7, %s7415_s23 }
  0x18   : > { %6923 = vrot.lane.b32.xlu1 %v6907_v7, %s7416_s26 }
  0x19   : > { %6913 = vrot.lane.b32.xlu0 %v6912_v8, %s7415_s23 }
  0x1c   : > { %6933 = vrot.lane.b32.xlu1 %v6917_v3, %s7416_s26 }
  0x1d   : > { %6928 = vrot.lane.b32.xlu0 %v6912_v8, %s7416_s26 }
  0x20   : > { %6943 = vrot.lane.b32.xlu1 %v6912_v8, %s7418_s27 }
  0x21   : > { %6938 = vrot.lane.b32.xlu0 %v6907_v7, %s7418_s27 }
  0x24   : > { %6953 = vrot.lane.b32.xlu1 %v6907_v7, %s7419_s28 }
  0x25   : > { %6948 = vrot.lane.b32.xlu0 %v6917_v3, %s7418_s27 }
  0x28   : > { %6963 = vrot.lane.b32.xlu1 %v6917_v3, %s7419_s28 }
  0x29   : > { %6958 = vrot.lane.b32.xlu0 %v6912_v8, %s7419_s28 }
  0x2c   : > { %6973 = vrot.lane.b32.xlu1 %v6917_v3, %s7420_s29 }
  0x2d   : > { %6968 = vrot.lane.b32.xlu0 %v6912_v8, %s7420_s29 }
  0x30   : > { %6983 = vrot.lane.b32.xlu1 %v6912_v8, %s7421_s30 }
  0x31   : > { %6978 = vrot.lane.b32.xlu0 %v6907_v7, %s7420_s29 }
  0x34   : > { %6993 = vrot.lane.b32.xlu1 %v6907_v7, %s7421_s30 }
  0x35   : > { %6988 = vrot.lane.b32.xlu0 %v6917_v3, %s7421_s30 }
  0x38   : > { %7003 = vrot.lane.b32.xlu1 %v6917_v3, %s8863_s12 }
  0x39   : > { %6998 = vrot.lane.b32.xlu0 %v6912_v8, %s8863_s12 }
  0x3c   : > { %7013 = vrot.lane.b32.xlu1 %v6912_v8, %s8861_s13 }
  0x3d   : > { %7008 = vrot.lane.b32.xlu0 %v6907_v7, %s8863_s12 }
  0x40   : > { %7023 = vrot.lane.b32.xlu1 %v6907_v7, %s8861_s13 }
  0x41   : > { %7018 = vrot.lane.b32.xlu0 %v6917_v3, %s8861_s13 }
  0x44   : > { %2143 = vperm.xlu1 %7028, %v2135_v11  }
  0x45   : > { %2138 = vperm.xlu0 %7027, %v2134_v12   ;;  %v5955_v12 = vld [vmem:[%s8851_s2 + $0x10] sm:$0xff] }
  0x86   : > { %v6919_v15 = vpop.permute.xlu1 %6918 }
  0x87   : > { %v6909_v17 = vpop.permute.xlu0 %6908  ;;  %v6921_v18 = vunpack.i.h.bf16 %v6919_v15  ;;  %v6920_v19 = vunpack.i.l.bf16 %v6919_v15 }
  0x88   : > { %v6911_v20 = vunpack.i.h.bf16 %v6909_v17  ;;  %v6910_v21 = vunpack.i.l.bf16 %v6909_v17 }
  0x8a   : > { %v6924_v22 = vpop.permute.xlu1 %6923  ;;  %v429_v26 = vsel %vm424_vm1, %v6920_v19, %v6910_v21  ;;  %v430_v27 = vsel %vm424_vm1, %v6921_v18, %v6911_v20 }
  0x8b   : > { %v6914_v23 = vpop.permute.xlu0 %6913  ;;  %v6926_v28 = vunpack.i.h.bf16 %v6924_v22  ;;  %v6925_v29 = vunpack.i.l.bf16 %v6924_v22  ;;  %v6467_v41 = vpack.c.bf16 %v430_v27, %v429_v26 }
  0x8c   : > { %v6916_v24 = vunpack.i.h.bf16 %v6914_v23  ;;  %v6915_v25 = vunpack.i.l.bf16 %v6914_v23 }
  0x8e   : > { %v427_v30 = vsel %vm424_vm1, %v6910_v21, %v6915_v25  ;;  %v428_v31 = vsel %vm424_vm1, %v6911_v20, %v6916_v24  ;;  %v425_v33 = vsel %vm424_vm1, %v6915_v25, %v6920_v19  ;;  %v426_v34 = vsel %vm424_vm1, %v6916_v24, %v6921_v18  ;;  %v6934_v35 = vpop.permute.xlu1 %6933 }
  0x8f   : > { %v6464_v36 = vpack.c.bf16 %v428_v31, %v427_v30  ;;  %v6470_v37 = vpack.c.bf16 %v426_v34, %v425_v33  ;;  %v6929_v38 = vpop.permute.xlu0 %6928  ;;  %v6935_v44 = vunpack.i.l.bf16 %v6934_v35  ;;  %v6936_v45 = vunpack.i.h.bf16 %v6934_v35  ;;  %v5956_v33 = vld [vmem:[%s8851_s2 + $0x18] sm:$0xff] }
  0x90   : > { %v6931_v42 = vunpack.i.h.bf16 %v6929_v38  ;;  %v6930_v43 = vunpack.i.l.bf16 %v6929_v38 }
  0x91   : > { %6466 = vmatprep.subr.msk.bf16.mxu0 %vm7580_vm5, %v6464_v36  ;;  %6472 = vmatprep.subr.msk.bf16.mxu1 %vm7580_vm5, %v6470_v37  ;;  %v786_v62 = vsel %vm781_vm3, %v6935_v44, %v6925_v29  ;;  %v787_v63 = vsel %vm781_vm3, %v6936_v45, %v6926_v28  ;;  %v5964_v36 = vld [vmem:[%s8851_s2 + $0x20] sm:$0xff] }
  0x92   : > { %6469 = vmatpush1.bf16.msk.msra.mxu0 %vm7580_vm5, %v6467_v41  ;;  %6475 = vmatpush3.bf16.msk.msra.mxu1 %vm7580_vm5, %v6470_v37  ;;  %v785_v48 = vsel %vm781_vm3, %v6926_v28, %v6931_v42  ;;  %v784_v49 = vsel %vm781_vm3, %v6925_v29, %v6930_v43  ;;  %v782_v50 = vsel %vm781_vm3, %v6930_v43, %v6935_v44  ;;  %v6944_v51 = vpop.permute.xlu1 %6943 }
  0x93   : > { %v783_v52 = vsel %vm781_vm3, %v6931_v42, %v6936_v45  ;;  %6478 = vmatprep.subr.msk.bf16.mxu0 %vm7580_vm5, %v6476_v39  ;;  %6484 = vmatprep.subr.msk.bf16.mxu1 %vm7580_vm5, %v6482_v40  ;;  %v6939_v53 = vpop.permute.xlu0 %6938  ;;  %v6488_v55 = vpack.c.bf16 %v785_v48, %v784_v49  ;;  %v6946_v59 = vunpack.i.h.bf16 %v6944_v51  ;;  %v6945_v60 = vunpack.i.l.bf16 %v6944_v51 }
  0x94   : > { %v6494_v56 = vpack.c.bf16 %v783_v52, %v782_v50  ;;  %v6941_v57 = vunpack.i.h.bf16 %v6939_v53  ;;  %v6940_v58 = vunpack.i.l.bf16 %v6939_v53  ;;  %v6491_v5 = vpack.c.bf16 %v787_v63, %v786_v62  ;;  %v5965_v53 = vld [vmem:[%s8851_s2 + $0x28] sm:$0xff] }
  0x95   : > { %5943 = vmatmul.mubr.msk.f32.vlgmr.msra.gmra.mrb[0].mxu0 %vm433_vm0, %v7534_v9  ;;  %6236 = vmatmul.mubr.msk.f32.vlgmr.msra.gmra.mrb[0].mxu1 %vm433_vm0, %v432_v47 }
  0x96   : > { %520 = vmatprep.mubr.f32.mxu0 %v7417_v10  ;;  %6481 = vmatpush1.bf16.msk.msra.mxu0 %vm7580_vm5, %v6479_v46  ;;  %v7627_v61 = vpop.permute.xlu1 %6953  ;;  %v979_v3 = vsel %vm976_vm6, %v6940_v58, %v6945_v60  ;;  %v980_v4 = vsel %vm976_vm6, %v6941_v57, %v6946_v59 }
  0x97   : > { %6487 = vmatpush3.bf16.msk.msra.mxu1 %vm7580_vm5, %v6482_v40  ;;  %6242 = vmatprep.mubr.msk.f32.mxu1 %vm433_vm0, %v5939_v54  ;;  %v6949_v0 = vpop.permute.xlu0 %6948  ;;  %v6500_v13 = vpack.c.bf16 %v980_v4, %v979_v3  ;;  %v6956_v17 = vunpack.i.h.bf16 %v7627_v61  ;;  %v6955_v18 = vunpack.i.l.bf16 %v7627_v61 }
  0x98   : > { %6490 = vmatprep.subr.msk.bf16.mxu0 %vm7580_vm5, %v6488_v55  ;;  %v6951_v1 = vunpack.i.h.bf16 %v6949_v0  ;;  %v6950_v2 = vunpack.i.l.bf16 %v6949_v0  ;;  %6496 = vmatprep.subr.msk.bf16.mxu1 %vm7580_vm5, %v6494_v56 }
  0x99   : > { %5944 = vmatmul.mubr.msk.f32.gmra.mrb[2].mxu0 %vm433_vm0, %v432_v47 }
  0x9a   : > { %681 = vmatprep.mubr.f32.mxu0 %v7417_v10  ;;  %v978_v7 = vsel %vm976_vm6, %v6946_v59, %v6951_v1  ;;  %v977_v8 = vsel %vm976_vm6, %v6945_v60, %v6950_v2  ;;  %v6964_v15 = vpop.permute.xlu1 %6963  ;;  %v981_v21 = vsel %vm976_vm6, %v6950_v2, %v6940_v58  ;;  %v982_v22 = vsel %vm976_vm6, %v6951_v1, %v6941_v57 }
  0x9b   : > { %v6959_v9 = vpop.permute.xlu0 %6958  ;;  %v6506_v11 = vpack.c.bf16 %v978_v7, %v977_v8  ;;  %v6966_v23 = vunpack.i.h.bf16 %v6964_v15  ;;  %v6965_v24 = vunpack.i.l.bf16 %v6964_v15  ;;  %v6503_v31 = vpack.c.bf16 %v982_v22, %v981_v21 }
  0x9c   : > { %v6961_v19 = vunpack.i.h.bf16 %v6959_v9  ;;  %v6960_v20 = vunpack.i.l.bf16 %v6959_v9  ;;  %v5974_v9 = vld [vmem:[%s8851_s2 + $0x38] sm:$0xff] }
  0x9d   : > { %5950 = vmatmul.mubr.msk.f32.vlgmr.msra.gmra.mrb[0].mxu0 %vm433_vm0, %v5939_v54  ;;  %6243 = vmatmul.mubr.msk.f32.vlgmr.msra.gmra.mrb[0].mxu1 %vm433_vm0, %v5940_v6  ;;  %v1176_v43 = vsel %vm1171_vm7, %v6965_v24, %v6955_v18  ;;  %v1177_v44 = vsel %vm1171_vm7, %v6966_v23, %v6956_v17 }
  0x9e   : > { %6493 = vmatpush1.bf16.msk.msra.mxu0 %vm7580_vm5, %v6491_v5  ;;  %687 = vmatprep.mubr.f32.mxu0 %v7417_v10  ;;  %v6974_v26 = vpop.permute.xlu1 %6973  ;;  %v1175_v27 = vsel %vm1171_vm7, %v6956_v17, %v6961_v19  ;;  %v1174_v28 = vsel %vm1171_vm7, %v6955_v18, %v6960_v20  ;;  %v1172_v29 = vsel %vm1171_vm7, %v6960_v20, %v6965_v24 }
  0x9f   : > { %6499 = vmatpush3.bf16.msk.msra.mxu1 %vm7580_vm5, %v6494_v56  ;;  %6249 = vmatprep.mubr.msk.f32.mxu1 %vm433_vm0, %v5955_v12  ;;  %v6969_v25 = vpop.permute.xlu0 %6968  ;;  %v1173_v30 = vsel %vm1171_vm7, %v6961_v19, %v6966_v23  ;;  %v6512_v34 = vpack.c.bf16 %v1175_v27, %v1174_v28  ;;  %v6976_v40 = vunpack.i.h.bf16 %v6974_v26  ;;  %v6975_v41 = vunpack.i.l.bf16 %v6974_v26  ;;  %v5973_v56 = vld [vmem:[%s8851_s2 + $0x30] sm:$0xff] }
  0xa0   : > { %6502 = vmatprep.subr.msk.bf16.mxu0 %vm7580_vm5, %v6500_v13  ;;  %6508 = vmatprep.subr.msk.bf16.mxu1 %vm7580_vm5, %v6506_v11  ;;  %v6518_v35 = vpack.c.bf16 %v1173_v30, %v1172_v29  ;;  %v6971_v38 = vunpack.i.h.bf16 %v6969_v25  ;;  %v6970_v39 = vunpack.i.l.bf16 %v6969_v25  ;;  %v6515_v52 = vpack.c.bf16 %v1177_v44, %v1176_v43  ;;  %v5982_v13 = vld [vmem:[%s8851_s2 + $0x50] sm:$0xff] }
  0xa1   : > { %5951 = vmatmul.mubr.msk.f32.gmra.mrb[2].mxu0 %vm433_vm0, %v5940_v6 }
  0xa2   : > { %870 = vmatprep.mubr.f32.mxu0 %v7417_v10  ;;  %v7697_v42 = vpop.permute.xlu1 %6983  ;;  %v1367_v48 = vsel %vm1366_vm8, %v6970_v39, %v6975_v41  ;;  %v1368_v49 = vsel %vm1366_vm8, %v6971_v38, %v6976_v40 }
  0xa3   : > { %v6979_v37 = vpop.permute.xlu0 %6978  ;;  %v6524_v54 = vpack.c.bf16 %v1368_v49, %v1367_v48  ;;  %v6986_v58 = vunpack.i.h.bf16 %v7697_v42  ;;  %v6985_v59 = vunpack.i.l.bf16 %v7697_v42 }
  0xa4   : > { %v6981_v45 = vunpack.i.h.bf16 %v6979_v37  ;;  %v6980_v46 = vunpack.i.l.bf16 %v6979_v37 }
  0xa5   : > { %5959 = vmatmul.mubr.msk.f32.vlgmr.msra.gmra.mrb[0].mxu0 %vm433_vm0, %v5955_v12  ;;  %6250 = vmatmul.mubr.msk.f32.vlgmr.msra.gmra.mrb[0].mxu1 %vm433_vm0, %v5956_v33 }
  0xa6   : > { %6505 = vmatpush1.bf16.msk.msra.mxu0 %vm7580_vm5, %v6503_v31  ;;  %876 = vmatprep.mubr.f32.mxu0 %v7417_v10  ;;  %v1372_v50 = vsel %vm1366_vm8, %v6976_v40, %v6981_v45  ;;  %v1371_v51 = vsel %vm1366_vm8, %v6975_v41, %v6980_v46  ;;  %v6994_v57 = vpop.permute.xlu1 %6993  ;;  %v1369_v63 = vsel %vm1366_vm8, %v6980_v46, %v6970_v39  ;;  %v5983_v31 = vld [vmem:[%s8851_s2 + $0x58] sm:$0xff] }
  0xa7   : > { %6511 = vmatpush3.bf16.msk.msra.mxu1 %vm7580_vm5, %v6506_v11  ;;  %6256 = vmatprep.mubr.msk.f32.mxu1 %vm433_vm0, %v5964_v36  ;;  %v6989_v47 = vpop.permute.xlu0 %6988  ;;  %v6530_v55 = vpack.c.bf16 %v1372_v50, %v1371_v51  ;;  %v1370_v0 = vsel %vm1366_vm8, %v6981_v45, %v6971_v38  ;;  %v6996_v1 = vunpack.i.h.bf16 %v6994_v57  ;;  %v6995_v2 = vunpack.i.l.bf16 %v6994_v57  ;;  %v5992_v51 = vld [vmem:[%s8851_s2 + $0x68] sm:$0xff] }
  0xa8   : > { %6514 = vmatprep.subr.msk.bf16.mxu0 %vm7580_vm5, %v6512_v34  ;;  %6520 = vmatprep.subr.msk.bf16.mxu1 %vm7580_vm5, %v6518_v35  ;;  %v6991_v60 = vunpack.i.h.bf16 %v6989_v47  ;;  %v6990_v61 = vunpack.i.l.bf16 %v6989_v47  ;;  %v6527_v8 = vpack.c.bf16 %v1370_v0, %v1369_v63  ;;  %v400_v0 = vld [vmem:[%s8849_s0] sm:$0x7] }
  0xa9   : > { %5960 = vmatmul.mubr.msk.f32.gmra.mrb[2].mxu0 %vm433_vm0, %v5956_v33  ;;  %v1564_v22 = vsel %vm1561_vm9, %v6995_v2, %v6985_v59  ;;  %v1565_v23 = vsel %vm1561_vm9, %v6996_v1, %v6986_v58 }
  0xaa   : > { %1065 = vmatprep.mubr.f32.mxu0 %v7417_v10  ;;  %v7004_v3 = vpop.permute.xlu1 %7003  ;;  %v1563_v4 = vsel %vm1561_vm9, %v6986_v58, %v6991_v60  ;;  %v1562_v5 = vsel %vm1561_vm9, %v6985_v59, %v6990_v61  ;;  %v1566_v6 = vsel %vm1561_vm9, %v6990_v61, %v6995_v2  ;;  %v1567_v7 = vsel %vm1561_vm9, %v6991_v60, %v6996_v1  ;;  %v6001_v58 = vld [vmem:[%s8851_s2 + $0x78] sm:$0xff]  ;;  %v6009_v59 = vld [vmem:[%s8851_s2 + $0x80] sm:$0xff]  ;;  %v6010_v60 = vld [vmem:[%s8851_s2 + $0x88] sm:$0xff] }
  0xab   : > { %v7734_v62 = vpop.permute.xlu0 %6998  ;;  %v6536_v11 = vpack.c.bf16 %v1563_v4, %v1562_v5  ;;  %v6542_v12 = vpack.c.bf16 %v1567_v7, %v1566_v6  ;;  %v7006_v19 = vunpack.i.h.bf16 %v7004_v3  ;;  %v7005_v20 = vunpack.i.l.bf16 %v7004_v3 }
  0xac   : > { %v7001_v17 = vunpack.i.h.bf16 %v7734_v62  ;;  %v7000_v18 = vunpack.i.l.bf16 %v7734_v62  ;;  %v6539_v30 = vpack.c.bf16 %v1565_v23, %v1564_v22  ;;  %v2173_v61 = vsub.s32 0, %v7875_v32 }
  0xad   : > { %5968 = vmatmul.mubr.msk.f32.vlgmr.msra.gmra.mrb[0].mxu0 %vm433_vm0, %v5964_v36  ;;  %6257 = vmatmul.mubr.msk.f32.vlgmr.msra.gmra.mrb[0].mxu1 %vm433_vm0, %v5965_v53  ;;  %v5991_v36 = vld [vmem:[%s8851_s2 + $0x60] sm:$0xff]  ;;  %v2181_v1 = vsub.s32 2, %v7875_v32  ;;  %v2177_v2 = vsub.s32 1, %v7875_v32 }
  0xae   : > { %6517 = vmatpush1.bf16.msk.msra.mxu0 %vm7580_vm5, %v6515_v52  ;;  %1071 = vmatprep.mubr.f32.mxu0 %v7417_v10  ;;  %v7014_v21 = vpop.permute.xlu1 %7013  ;;  %v1757_v26 = vsel %vm1756_vm10, %v7000_v18, %v7005_v20  ;;  %v1758_v27 = vsel %vm1756_vm10, %v7001_v17, %v7006_v19  ;;  %v7883_v6 = vrot.slane %v400_v0, %v2173_v61 }
  0xaf   : > { %6523 = vmatpush3.bf16.msk.msra.mxu1 %vm7580_vm5, %v6518_v35  ;;  %6263 = vmatprep.mubr.msk.f32.mxu1 %vm433_vm0, %v5973_v56  ;;  %v7009_v15 = vpop.permute.xlu0 %7008  ;;  %v6548_v34 = vpack.c.bf16 %v1758_v27, %v1757_v26  ;;  %v7016_v38 = vunpack.i.h.bf16 %v7014_v21  ;;  %v7015_v39 = vunpack.i.l.bf16 %v7014_v21 }
  0xb0   : > { %6526 = vmatprep.subr.msk.bf16.mxu0 %vm7580_vm5, %v6524_v54  ;;  %6532 = vmatprep.subr.msk.bf16.mxu1 %vm7580_vm5, %v6530_v55  ;;  %v7011_v24 = vunpack.i.h.bf16 %v7009_v15  ;;  %v7010_v25 = vunpack.i.l.bf16 %v7009_v15  ;;  %v6000_v54 = vld [vmem:[%s8851_s2 + $0x70] sm:$0xff] }
  0xb1   : > { %5969 = vmatmul.mubr.msk.f32.gmra.mrb[2].mxu0 %vm433_vm0, %v5965_v53 }
  0xb2   : > { %1260 = vmatprep.mubr.f32.mxu0 %v7417_v10  ;;  %v1762_v28 = vsel %vm1756_vm10, %v7006_v19, %v7011_v24  ;;  %v1761_v29 = vsel %vm1756_vm10, %v7005_v20, %v7010_v25  ;;  %v7024_v37 = vpop.permute.xlu1 %7023  ;;  %v1759_v42 = vsel %vm1756_vm10, %v7010_v25, %v7000_v18  ;;  %v1760_v43 = vsel %vm1756_vm10, %v7011_v24, %v7001_v17 }
  0xb3   : > { %v7019_v33 = vpop.permute.xlu0 %7018  ;;  %v6554_v35 = vpack.c.bf16 %v1762_v28, %v1761_v29  ;;  %v7026_v44 = vunpack.i.h.bf16 %v7024_v37  ;;  %v7025_v45 = vunpack.i.l.bf16 %v7024_v37  ;;  %v6551_v50 = vpack.c.bf16 %v1760_v43, %v1759_v42 }
  0xb4   : > { %v7021_v40 = vunpack.i.h.bf16 %v7019_v33  ;;  %v7020_v41 = vunpack.i.l.bf16 %v7019_v33 }
  0xb5   : > { %5977 = vmatmul.mubr.msk.f32.vlgmr.msra.gmra.mrb[0].mxu0 %vm433_vm0, %v5973_v56  ;;  %6264 = vmatmul.mubr.msk.f32.vlgmr.msra.gmra.mrb[0].mxu1 %vm433_vm0, %v5974_v9  ;;  %v1955_v56 = vsel %vm1951_vm11, %v7026_v44, %v7016_v38 }
  0xb6   : > { %6529 = vmatpush1.bf16.msk.msra.mxu0 %vm7580_vm5, %v6527_v8  ;;  %1266 = vmatprep.mubr.f32.mxu0 %v7417_v10  ;;  %v1953_v46 = vsel %vm1951_vm11, %v7016_v38, %v7021_v40  ;;  %v1952_v47 = vsel %vm1951_vm11, %v7015_v39, %v7020_v41  ;;  %v1956_v48 = vsel %vm1951_vm11, %v7020_v41, %v7025_v45 }
  0xb7   : > { %6535 = vmatpush3.bf16.msk.msra.mxu1 %vm7580_vm5, %v6530_v55  ;;  %6270 = vmatprep.mubr.msk.f32.mxu1 %vm433_vm0, %v5982_v13  ;;  %v1957_v49 = vsel %vm1951_vm11, %v7021_v40, %v7026_v44  ;;  %v6560_v52 = vpack.c.bf16 %v1953_v46, %v1952_v47  ;;  %v1954_v55 = vsel %vm1951_vm11, %v7025_v45, %v7015_v39  ;;  %v3827_v45 = vld [vmem:[%s8854_s5] sm:$0xff]  ;;  %v3828_v46 = vld [vmem:[%s8854_s5 + $0x8] sm:$0xff] }
  0xb8   : > { %6538 = vmatprep.subr.msk.bf16.mxu0 %vm7580_vm5, %v6536_v11  ;;  %6544 = vmatprep.subr.msk.bf16.mxu1 %vm7580_vm5, %v6542_v12  ;;  %v6566_v53 = vpack.c.bf16 %v1957_v49, %v1956_v48  ;;  %v6563_v57 = vpack.c.bf16 %v1955_v56, %v1954_v55  ;;  %v3916_v47 = vld [vmem:[%s8856_s7] sm:$0xff]  ;;  %v3917_v48 = vld [vmem:[%s8856_s7 + $0x8] sm:$0xff]  ;;  %v3918_v49 = vld [vmem:[%s8856_s7 + $0x10] sm:$0xff] }
  0xb9   : > { %5978 = vmatmul.mubr.msk.f32.gmra.mrb[2].mxu0 %vm433_vm0, %v5974_v9  ;;  %v7885_v9 = vrot.slane %v400_v0, %v2181_v1 }
  0xba   : > { %1455 = vmatprep.mubr.f32.mxu0 %v7417_v10 }
  0xbd   : > { %5986 = vmatmul.mubr.msk.f32.vlgmr.msra.gmra.mrb[0].mxu0 %vm433_vm0, %v5982_v13  ;;  %6271 = vmatmul.mubr.msk.f32.vlgmr.msra.gmra.mrb[0].mxu1 %vm433_vm0, %v5983_v31 }
  0xbe   : > { %6541 = vmatpush1.bf16.msk.msra.mxu0 %vm7580_vm5, %v6539_v30  ;;  %1461 = vmatprep.mubr.f32.mxu0 %v7417_v10 }
  0xbf   : > { %6547 = vmatpush3.bf16.msk.msra.mxu1 %vm7580_vm5, %v6542_v12  ;;  %6277 = vmatprep.mubr.msk.f32.mxu1 %vm433_vm0, %v5991_v36  ;;  %v7887_v12 = vrot.slane %v400_v0, %v2177_v2 }
  0xc0   : > { %6550 = vmatprep.subr.msk.bf16.mxu0 %vm7580_vm5, %v6548_v34  ;;  %6556 = vmatprep.subr.msk.bf16.mxu1 %vm7580_vm5, %v6554_v35 }
  0xc1   : > { %5987 = vmatmul.mubr.msk.f32.gmra.mrb[2].mxu0 %vm433_vm0, %v5983_v31 }
  0xc2   : > { %1650 = vmatprep.mubr.f32.mxu0 %v7417_v10 }
  0xc3   : > { %v2144_v62 = vpop.permute.xlu1 %2143 }
  0xc4   : > { %v2139_v63 = vpop.permute.xlu0 %2138 }
  0xc5   : > { %5995 = vmatmul.mubr.msk.f32.vlgmr.msra.gmra.mrb[0].mxu0 %vm433_vm0, %v5991_v36  ;;  %6278 = vmatmul.mubr.msk.f32.vlgmr.msra.gmra.mrb[0].mxu1 %vm433_vm0, %v5992_v51 }
  0xc6   : > { %6553 = vmatpush1.bf16.msk.msra.mxu0 %vm7580_vm5, %v6551_v50  ;;  %1656 = vmatprep.mubr.f32.mxu0 %v7417_v10  ;;  %v3919_v50 = vld [vmem:[%s8856_s7 + $0x18] sm:$0xff] }
  0xc7   : > { %6559 = vmatpush3.bf16.msk.msra.mxu1 %vm7580_vm5, %v6554_v35  ;;  %6284 = vmatprep.mubr.msk.f32.mxu1 %vm433_vm0, %v6000_v54 }
  0xc8   : > { %6562 = vmatprep.subr.msk.bf16.mxu0 %vm7580_vm5, %v6560_v52  ;;  %6568 = vmatprep.subr.msk.bf16.mxu1 %vm7580_vm5, %v6566_v53 }
  0xc9   : > { %5996 = vmatmul.mubr.msk.f32.gmra.mrb[2].mxu0 %vm433_vm0, %v5992_v51 }
  0xca   : > { %1845 = vmatprep.mubr.f32.mxu0 %v7417_v10 }
  0xcd   : > { %6004 = vmatmul.mubr.msk.f32.vlgmr.msra.gmra.mrb[0].mxu0 %vm433_vm0, %v6000_v54  ;;  %6285 = vmatmul.mubr.msk.f32.vlgmr.msra.gmra.mrb[0].mxu1 %vm433_vm0, %v6001_v58 }
  0xce   : > { %6565 = vmatpush1.bf16.msk.msra.mxu0 %vm7580_vm5, %v6563_v57  ;;  %1851 = vmatprep.mubr.f32.mxu0 %v7417_v10 }
  0xcf   : > { %6571 = vmatpush3.bf16.msk.msra.mxu1 %vm7580_vm5, %v6566_v53  ;;  %6291 = vmatprep.mubr.msk.f32.mxu1 %vm433_vm0, %v6009_v59 }
  0xd1   : > { %6005 = vmatmul.mubr.msk.f32.gmra.mrb[2].mxu0 %vm433_vm0, %v6001_v58 }
  0xd2   : > { %2040 = vmatprep.mubr.f32.mxu0 %v7417_v10 }
  0xd5   : > { %6013 = vmatmul.mubr.msk.f32.vlgmr.msra.gmra.mrb[0].mxu0 %vm433_vm0, %v6009_v59  ;;  %6292 = vmatmul.mubr.msk.f32.vlgmr.msra.gmra.mrb[0].mxu1 %vm433_vm0, %v6010_v60 }
  0xd6   : > { %2046 = vmatprep.mubr.f32.mxu0 %v7417_v10  ;;  %2286 = vmatprep.mubr.f32.mxu1 %v7417_v10 }
  0xd9   : > { %6014 = vmatmul.mubr.msk.f32.gmra.mrb[2].mxu0 %vm433_vm0, %v6010_v60 }
  0xda   : > { %4017 = vmatprep.mubr.f32.mxu0 %v7417_v10 }
 0x1a8   : > { %v2042_v3 = vpop.f32.mrb[0].mxu0  ;;  %v6293_v4 = vpop.f32.mrb[0].mxu1 }
 0x1a9   : > { %v2146_v5 = vadd.f32 %v2139_v63, %v2042_v3  ;;  %v2151_v7 = vadd.f32 %v6293_v4, %v2144_v62  ;;  %v2044_v14 = vpop.f32.mrb[1].mxu0  ;;  %v2119_v8 = vpop.f32.mrb[1].mxu1 }
 0x1aa   : > { %v2147_v11 = vadd.f32 %v2139_v63, %v2044_v14  ;;  %v2148_v13 = vadd.f32 %v2139_v63, %v2119_v8 }
 0x1ab   : > { %vm2152_vm12 = vcmp.ge.f32.partialorder %v2146_v5, 0.0  ;;  %v2158_v15 = vmul.f32 0.1, %v2146_v5  ;;  %vm2157_vm13 = vcmp.ge.f32.partialorder %v2151_v7, 0.0  ;;  %v2163_v17 = vmul.f32 0.1, %v2151_v7 }
 0x1ac   : > { %vm2153_vm14 = vcmp.ge.f32.partialorder %v2147_v11, 0.0  ;;  %v2159_v18 = vmul.f32 0.1, %v2147_v11  ;;  %vm2154_vm15 = vcmp.ge.f32.partialorder %v2148_v13, 0.0  ;;  %v2160_v19 = vmul.f32 0.1, %v2148_v13 }
 0x1ad   : > { %v2164_v20 = vsel %vm2152_vm12, %v2146_v5, %v2158_v15  ;;  %v2169_v21 = vsel %vm2157_vm13, %v2151_v7, %v2163_v17  ;;  %v2048_v22 = vpop.f32.mrb[2].mxu0  ;;  %v2213_v5 = vld [vmem:[%s8853_s4] sm:$0xff]  ;;  %v2214_v7 = vld [vmem:[%s8853_s4 + $0x8] sm:$0xff] }
 0x1ae   : > { %v2191_v23 = vmul.f32 %v7885_v9, %v2169_v21  ;;  %v2165_v24 = vsel %vm2153_vm14, %v2147_v11, %v2159_v18  ;;  %v2166_v25 = vsel %vm2154_vm15, %v2148_v13, %v2160_v19  ;;  %v2050_v26 = vpop.f32.mrb[3].mxu0  ;;  %v2149_v28 = vadd.f32 %v2144_v62, %v2048_v22  ;;  %v6018_v19 = vld [vmem:[%s8853_s4 + $0x40] sm:$0xff] }
 0x1af   : > { %v2188_v27 = vmul.f32 %v7885_v9, %v2166_v25  ;;  %v2150_v29 = vadd.f32 %v2144_v62, %v2050_v26  ;;  %v7892_v30 = vmul.f32 %v7883_v6, %v2164_v20  ;;  %v7895_v31 = vmul.f32 %v7887_v12, %v2165_v24  ;;  %v6019_v25 = vld [vmem:[%s8853_s4 + $0x48] sm:$0xff] }
 0x1b0   : > { %vm2155_vm0 = vcmp.ge.f32.partialorder %v2149_v28, 0.0  ;;  %v2161_v33 = vmul.f32 0.1, %v2149_v28  ;;  %vm3893_vm14 = vcmask 1043456  }
 0x1b1   : > { %vm2156_vm2 = vcmp.ge.f32.partialorder %v2150_v29, 0.0  ;;  %v2162_v34 = vmul.f32 0.1, %v2150_v29  ;;  %v7039_v35 = vpack.i.bf16 %v2191_v23, %v2188_v27  ;;  %v7903_v40 = vpack.c.bf16 %v2191_v23, %v2188_v27 }
 0x1b2   : > { %v2167_v36 = vsel %vm2155_vm0, %v2149_v28, %v2161_v33 }
 0x1b3   : > { %v2168_v37 = vsel %vm2156_vm2, %v2150_v29, %v2162_v34  ;;  %v7898_v38 = vmul.f32 %v7883_v6, %v2167_v36 }
 0x1b4   : > { %v7901_v39 = vmul.f32 %v7887_v12, %v2168_v37 }
 0x1b5   : > { %v7029_v41 = vpack.i.bf16 %v7898_v38, %v7892_v30  ;;  %v6582_v44 = vpack.c.bf16 %v7898_v38, %v7892_v30 }
 0x1b6   : > { %v7034_v42 = vpack.i.bf16 %v7901_v39, %v7895_v31  ;;  %v6580_v43 = vpack.c.bf16 %v7901_v39, %v7895_v31 }
 0x1b7   : > { %7030 = vrot.lane.b32.xlu1 %v7029_v41, %s7415_s23 }
 0x1b8   : > { %7035 = vrot.lane.b32.xlu0 %v7034_v42, %s7415_s23 }
 0x1bb   : > { %7040 = vrot.lane.b32.xlu1 %v7039_v35, %s7415_s23 }
 0x1bc   : > { %7045 = vrot.lane.b32.xlu0 %v7029_v41, %s7416_s26 }
 0x1bf   : > { %7050 = vrot.lane.b32.xlu1 %v7034_v42, %s7416_s26 }
 0x1c0   : > { %7055 = vrot.lane.b32.xlu0 %v7039_v35, %s7416_s26 }
 0x1c3   : > { %7060 = vrot.lane.b32.xlu1 %v7029_v41, %s7418_s27 }
 0x1c4   : > { %7065 = vrot.lane.b32.xlu0 %v7034_v42, %s7418_s27 }
 0x1c7   : > { %7070 = vrot.lane.b32.xlu1 %v7039_v35, %s7418_s27 }
 0x1c8   : > { %7075 = vrot.lane.b32.xlu0 %v7029_v41, %s7419_s28 }
 0x1cb   : > { %7080 = vrot.lane.b32.xlu1 %v7034_v42, %s7419_s28 }
 0x1cc   : > { %7085 = vrot.lane.b32.xlu0 %v7039_v35, %s7419_s28 }
 0x1cf   : > { %7095 = vrot.lane.b32.xlu1 %v7034_v42, %s7420_s29 }
 0x1d0   : > { %7090 = vrot.lane.b32.xlu0 %v7039_v35, %s7420_s29 }
 0x1d3   : > { %7100 = vrot.lane.b32.xlu1 %v7029_v41, %s7420_s29 }
 0x1d4   : > { %7110 = vrot.lane.b32.xlu0 %v7034_v42, %s7421_s30 }
 0x1d7   : > { %7105 = vrot.lane.b32.xlu1 %v7039_v35, %s7421_s30 }
 0x1d8   : > { %7115 = vrot.lane.b32.xlu0 %v7029_v41, %s7421_s30 }
 0x1db   : > { %7125 = vrot.lane.b32.xlu1 %v7034_v42, %s8863_s12 }
 0x1dc   : > { %7120 = vrot.lane.b32.xlu0 %v7039_v35, %s8863_s12 }
 0x1df   : > { %7130 = vrot.lane.b32.xlu1 %v7029_v41, %s8863_s12 }
 0x1e0   : > { %7140 = vrot.lane.b32.xlu0 %v7034_v42, %s8861_s13 }
 0x1e3   : > { %7135 = vrot.lane.b32.xlu1 %v7039_v35, %s8861_s13 }
 0x1e4   : > { %7145 = vrot.lane.b32.xlu0 %v7029_v41, %s8861_s13 }
 0x1e7   : > { %3831 = vperm.xlu1 %7028, %v3827_v45  }
 0x1e8   : > { %3836 = vperm.xlu0 %7027, %v3828_v46   ;;  %v6029_v46 = vld [vmem:[%s8853_s4 + $0x18] sm:$0xff] }
 0x1eb   : > { %3922 = vperm.xlu1 %7028, %v3916_v47  }
 0x1ec   : > { %3927 = vperm.xlu0 %7027, %v3917_v48  }
 0x1ef   : > { %3932 = vperm.xlu1 %7028, %v3918_v49  }
 0x1f0   : > { %3937 = vperm.xlu0 %7027, %v3919_v50  }
 0x229   : > { %v7031_v51 = vpop.permute.xlu1 %7030 }
 0x22a   : > { %v7036_v52 = vpop.permute.xlu0 %7035  ;;  %v7033_v53 = vunpack.i.h.bf16 %v7031_v51  ;;  %v7032_v54 = vunpack.i.l.bf16 %v7031_v51 }
 0x22b   : > { %v7038_v55 = vunpack.i.h.bf16 %v7036_v52  ;;  %v7037_v56 = vunpack.i.l.bf16 %v7036_v52 }
 0x22d   : > { %v2209_v57 = vsel %vm424_vm1, %v7032_v54, %v7037_v56  ;;  %v2210_v58 = vsel %vm424_vm1, %v7033_v53, %v7038_v55  ;;  %v7041_v59 = vpop.permute.xlu1 %7040 }
 0x22e   : > { %v6572_v60 = vpack.c.bf16 %v2210_v58, %v2209_v57  ;;  %v7043_v61 = vunpack.i.h.bf16 %v7041_v59  ;;  %v7042_v62 = vunpack.i.l.bf16 %v7041_v59  ;;  %v7046_v14 = vpop.permute.xlu0 %7045 }
 0x22f   : > { %v7048_v15 = vunpack.i.h.bf16 %v7046_v14  ;;  %v7047_v17 = vunpack.i.l.bf16 %v7046_v14 }
 0x230   : > { %6573 = vmatprep.subr.bf16.mxu1 %v6572_v60  ;;  %v2211_v63 = vsel %vm424_vm1, %v7042_v62, %v7032_v54  ;;  %v2212_v0 = vsel %vm424_vm1, %v7043_v61, %v7033_v53  ;;  %v2207_v1 = vsel %vm424_vm1, %v7037_v56, %v7042_v62  ;;  %v2208_v2 = vsel %vm424_vm1, %v7038_v55, %v7043_v61  ;;  %v6034_v60 = vld [vmem:[%s8853_s4 + $0x20] sm:$0xff] }
 0x231   : > { %v6574_v3 = vpack.c.bf16 %v2212_v0, %v2211_v63  ;;  %v6576_v4 = vpack.c.bf16 %v2208_v2, %v2207_v1  ;;  %v7051_v8 = vpop.permute.xlu1 %7050  ;;  %v6035_v2 = vld [vmem:[%s8853_s4 + $0x28] sm:$0xff] }
 0x232   : > { %v7053_v11 = vunpack.i.h.bf16 %v7051_v8  ;;  %v7052_v13 = vunpack.i.l.bf16 %v7051_v8  ;;  %v7056_v18 = vpop.permute.xlu0 %7055 }
 0x233   : > { %6575 = vmatpush1.bf16.msra.mxu1 %v6574_v3  ;;  %v7058_v22 = vunpack.i.h.bf16 %v7056_v18  ;;  %v7057_v23 = vunpack.i.l.bf16 %v7056_v18 }
 0x234   : > { %6577 = vmatprep.subr.bf16.mxu1 %v6576_v4  ;;  %v2546_v20 = vsel %vm781_vm3, %v7047_v17, %v7052_v13  ;;  %v2547_v21 = vsel %vm781_vm3, %v7048_v15, %v7053_v11 }
 0x235   : > { %v6588_v24 = vpack.c.bf16 %v2547_v21, %v2546_v20  ;;  %v7061_v26 = vpop.permute.xlu1 %7060  ;;  %v2548_v28 = vsel %vm781_vm3, %v7057_v23, %v7047_v17  ;;  %v2549_v29 = vsel %vm781_vm3, %v7058_v22, %v7048_v15  ;;  %v2544_v30 = vsel %vm781_vm3, %v7052_v13, %v7057_v23  ;;  %v6040_v21 = vld [vmem:[%s8853_s4 + $0x30] sm:$0xff] }
 0x236   : > { %6020 = vmatmul.mubr.msk.f32.vlgmr.msra.gmra.mrb[2].mxu1 %vm2215_vm4, %v2213_v5  ;;  %v7066_v27 = vpop.permute.xlu0 %7065  ;;  %v2545_v31 = vsel %vm781_vm3, %v7053_v11, %v7058_v22  ;;  %v7063_v33 = vunpack.i.h.bf16 %v7061_v26  ;;  %v7062_v34 = vunpack.i.l.bf16 %v7061_v26  ;;  %v6590_v37 = vpack.c.bf16 %v2549_v29, %v2548_v28 }
 0x237   : > { %6579 = vmatpush3.bf16.msra.mxu1 %v6576_v4  ;;  %2292 = vmatprep.mubr.f32.mxu1 %v7417_v10  ;;  %v7068_v35 = vunpack.i.h.bf16 %v7066_v27  ;;  %v7067_v36 = vunpack.i.l.bf16 %v7066_v27  ;;  %v6592_v39 = vpack.c.bf16 %v2545_v31, %v2544_v30  ;;  %v6041_v27 = vld [vmem:[%s8853_s4 + $0x38] sm:$0xff] }
 0x238   : > { %6581 = vmatprep.subr.bf16.mxu1 %v6580_v43 }
 0x239   : > { %v7071_v38 = vpop.permute.xlu1 %7070  ;;  %v2731_v41 = vsel %vm976_vm6, %v7062_v34, %v7067_v36  ;;  %v2732_v42 = vsel %vm976_vm6, %v7063_v33, %v7068_v35 }
 0x23a   : > { %6021 = vmatmul.mubr.msk.f32.gmra.mrb[4].mxu1 %vm2215_vm4, %v2214_v7  ;;  %v7073_v43 = vunpack.i.h.bf16 %v7071_v38  ;;  %v6596_v45 = vpack.c.bf16 %v2732_v42, %v2731_v41  ;;  %v7076_v47 = vpop.permute.xlu0 %7075  ;;  %v6046_v42 = vld [vmem:[%s8853_s4 + $0x50] sm:$0xff] }
 0x23b   : > { %6298 = vmatprep.mubr.msk.f32.mxu1 %vm2215_vm4, %v2213_v5  ;;  %v7078_v56 = vunpack.i.h.bf16 %v7076_v47  ;;  %v7077_v57 = vunpack.i.l.bf16 %v7076_v47 }
 0x23c   : > { %v2734_v50 = vsel %vm976_vm6, %v7073_v43, %v7063_v33  ;;  %v2730_v54 = vsel %vm976_vm6, %v7068_v35, %v7073_v43 }
 0x23d   : > { %v7081_v48 = vpop.permute.xlu1 %7080 }
 0x23e   : > { %6299 = vmatmul.mubr.msk.f32.vlgmr.msra.gmra.mrb[6].mxu1 %vm2215_vm4, %v2214_v7  ;;  %v7083_v51 = vunpack.i.h.bf16 %v7081_v48  ;;  %v7082_v52 = vunpack.i.l.bf16 %v7081_v48  ;;  %v7086_v58 = vpop.permute.xlu0 %7085  ;;  %v6047_v48 = vld [vmem:[%s8853_s4 + $0x58] sm:$0xff] }
 0x23f   : > { %6583 = vmatpush1.bf16.msra.mxu1 %v6582_v44  ;;  %2444 = vmatprep.mubr.f32.mxu1 %v7417_v10  ;;  %v7072_v44 = vunpack.i.l.bf16 %v7071_v38  ;;  %v7088_v63 = vunpack.i.h.bf16 %v7086_v58  ;;  %v7087_v0 = vunpack.i.l.bf16 %v7086_v58 }
 0x240   : > { %6585 = vmatprep.subr.bf16.mxu1 %v7903_v40  ;;  %v2916_v61 = vsel %vm1171_vm7, %v7077_v57, %v7082_v52  ;;  %v2917_v62 = vsel %vm1171_vm7, %v7078_v56, %v7083_v51 }
 0x241   : > { %v2733_v49 = vsel %vm976_vm6, %v7072_v44, %v7062_v34  ;;  %v2729_v53 = vsel %vm976_vm6, %v7067_v36, %v7072_v44  ;;  %v6604_v1 = vpack.c.bf16 %v2917_v62, %v2916_v61  ;;  %v7096_v3 = vpop.permute.xlu1 %7095  ;;  %v2918_v5 = vsel %vm1171_vm7, %v7087_v0, %v7077_v57  ;;  %v6052_v62 = vld [vmem:[%s8853_s4 + $0x60] sm:$0xff] }
 0x242   : > { %6024 = vmatmul.mubr.msk.f32.vlgmr.msra.gmra.mrb[2].mxu1 %vm2215_vm4, %v6018_v19  ;;  %v6598_v55 = vpack.c.bf16 %v2734_v50, %v2733_v49  ;;  %v6600_v59 = vpack.c.bf16 %v2730_v54, %v2729_v53  ;;  %v7091_v4 = vpop.permute.xlu0 %7090  ;;  %v2919_v7 = vsel %vm1171_vm7, %v7088_v63, %v7078_v56  ;;  %v2914_v14 = vsel %vm1171_vm7, %v7082_v52, %v7087_v0 }
 0x243   : > { %6587 = vmatpush3.bf16.msra.mxu1 %v7903_v40  ;;  %2450 = vmatprep.mubr.f32.mxu1 %v7417_v10  ;;  %v6028_v40 = vld [vmem:[%s8853_s4 + $0x10] sm:$0xff]  ;;  %v2915_v8 = vsel %vm1171_vm7, %v7083_v51, %v7088_v63  ;;  %v7098_v11 = vunpack.i.h.bf16 %v7096_v3  ;;  %v7097_v13 = vunpack.i.l.bf16 %v7096_v3  ;;  %v7093_v15 = vunpack.i.h.bf16 %v7091_v4 }
 0x244   : > { %6589 = vmatprep.subr.bf16.mxu1 %v6588_v24  ;;  %v7092_v17 = vunpack.i.l.bf16 %v7091_v4  ;;  %v6606_v18 = vpack.c.bf16 %v2919_v7, %v2918_v5  ;;  %v6608_v20 = vpack.c.bf16 %v2915_v8, %v2914_v14  ;;  %v6053_v4 = vld [vmem:[%s8853_s4 + $0x68] sm:$0xff] }
 0x245   : > { %v3100_v23 = vsel %vm1366_vm8, %v7098_v11, %v7093_v15 }
 0x246   : > { %6025 = vmatmul.mubr.msk.f32.gmra.mrb[4].mxu1 %vm2215_vm4, %v6019_v25  ;;  %v3099_v22 = vsel %vm1366_vm8, %v7097_v13, %v7092_v17  ;;  %v7111_v28 = vpop.permute.xlu0 %7110 }
 0x247   : > { %6305 = vmatprep.mubr.msk.f32.mxu1 %vm2215_vm4, %v6018_v19  ;;  %v7101_v19 = vpop.permute.xlu1 %7100  ;;  %v6612_v26 = vpack.c.bf16 %v3100_v23, %v3099_v22  ;;  %v7113_v38 = vunpack.i.h.bf16 %v7111_v28  ;;  %v6058_v23 = vld [vmem:[%s8853_s4 + $0x70] sm:$0xff] }
 0x248   : > { %v7103_v24 = vunpack.i.h.bf16 %v7101_v19 }
 0x24a   : > { %6306 = vmatmul.mubr.msk.f32.vlgmr.msra.gmra.mrb[6].mxu1 %vm2215_vm4, %v6019_v25  ;;  %v7102_v25 = vunpack.i.l.bf16 %v7101_v19  ;;  %v3102_v31 = vsel %vm1366_vm8, %v7103_v24, %v7098_v11  ;;  %v3104_v36 = vsel %vm1366_vm8, %v7093_v15, %v7103_v24 }
 0x24b   : > { %6591 = vmatpush1.bf16.msra.mxu1 %v6590_v37  ;;  %2623 = vmatprep.mubr.f32.mxu1 %v7417_v10  ;;  %v7106_v29 = vpop.permute.xlu1 %7105 }
 0x24c   : > { %6593 = vmatprep.subr.bf16.mxu1 %v6592_v39  ;;  %v3101_v30 = vsel %vm1366_vm8, %v7102_v25, %v7097_v13  ;;  %v7108_v33 = vunpack.i.h.bf16 %v7106_v29  ;;  %v7107_v34 = vunpack.i.l.bf16 %v7106_v29  ;;  %v3103_v35 = vsel %vm1366_vm8, %v7092_v17, %v7102_v25  ;;  %v6059_v29 = vld [vmem:[%s8853_s4 + $0x78] sm:$0xff] }
 0x24d   : > { %v6614_v37 = vpack.c.bf16 %v3102_v31, %v3101_v30  ;;  %v6616_v41 = vpack.c.bf16 %v3104_v36, %v3103_v35 }
 0x24e   : > { %6030 = vmatmul.mubr.msk.f32.vlgmr.msra.gmra.mrb[2].mxu1 %vm2215_vm4, %v6028_v40  ;;  %v3285_v44 = vsel %vm1561_vm9, %v7113_v38, %v7108_v33 }
 0x24f   : > { %6595 = vmatpush3.bf16.msra.mxu1 %v6592_v39  ;;  %2629 = vmatprep.mubr.f32.mxu1 %v7417_v10  ;;  %v7112_v39 = vunpack.i.l.bf16 %v7111_v28  ;;  %v7126_v49 = vpop.permute.xlu1 %7125 }
 0x250   : > { %6597 = vmatprep.subr.bf16.mxu1 %v6596_v45  ;;  %v7127_v56 = vunpack.i.l.bf16 %v7126_v49 }
 0x251   : > { %v3284_v43 = vsel %vm1561_vm9, %v7112_v39, %v7107_v34 }
 0x252   : > { %6031 = vmatmul.mubr.msk.f32.gmra.mrb[4].mxu1 %vm2215_vm4, %v6029_v46  ;;  %v6620_v47 = vpack.c.bf16 %v3285_v44, %v3284_v43 }
 0x253   : > { %6312 = vmatprep.mubr.msk.f32.mxu1 %vm2215_vm4, %v6028_v40  ;;  %v7116_v40 = vpop.permute.xlu0 %7115 }
 0x254   : > { %v7118_v45 = vunpack.i.h.bf16 %v7116_v40 }
 0x256   : > { %6313 = vmatmul.mubr.msk.f32.vlgmr.msra.gmra.mrb[6].mxu1 %vm2215_vm4, %v6029_v46  ;;  %v7117_v46 = vunpack.i.l.bf16 %v7116_v40  ;;  %v3287_v52 = vsel %vm1561_vm9, %v7118_v45, %v7113_v38  ;;  %v3289_v54 = vsel %vm1561_vm9, %v7108_v33, %v7118_v45  ;;  %v6065_v38 = vld [vmem:[%s8853_s4 + $0x88] sm:$0xff] }
 0x257   : > { %6599 = vmatpush1.bf16.msra.mxu1 %v6598_v55  ;;  %2808 = vmatprep.mubr.f32.mxu1 %v7417_v10  ;;  %v7121_v50 = vpop.permute.xlu0 %7120  ;;  %v7128_v55 = vunpack.i.h.bf16 %v7126_v49 }
 0x258   : > { %6601 = vmatprep.subr.bf16.mxu1 %v6600_v59  ;;  %v3286_v51 = vsel %vm1561_vm9, %v7117_v46, %v7112_v39  ;;  %v3288_v53 = vsel %vm1561_vm9, %v7107_v34, %v7117_v46  ;;  %v7123_v57 = vunpack.i.h.bf16 %v7121_v50  ;;  %v7122_v58 = vunpack.i.l.bf16 %v7121_v50 }
 0x259   : > { %v6624_v61 = vpack.c.bf16 %v3289_v54, %v3288_v53 }
 0x25a   : > { %6036 = vmatmul.mubr.msk.f32.vlgmr.msra.gmra.mrb[2].mxu1 %vm2215_vm4, %v6034_v60  ;;  %v3469_v63 = vsel %vm1756_vm10, %v7127_v56, %v7122_v58  ;;  %v3470_v0 = vsel %vm1756_vm10, %v7128_v55, %v7123_v57 }
 0x25b   : > { %6603 = vmatpush3.bf16.msra.mxu1 %v6600_v59  ;;  %2814 = vmatprep.mubr.f32.mxu1 %v7417_v10  ;;  %v6622_v59 = vpack.c.bf16 %v3287_v52, %v3286_v51  ;;  %v6628_v3 = vpack.c.bf16 %v3470_v0, %v3469_v63  ;;  %v7141_v7 = vpop.permute.xlu0 %7140 }
 0x25c   : > { %6605 = vmatprep.subr.bf16.mxu1 %v6604_v1  ;;  %v7143_v19 = vunpack.i.h.bf16 %v7141_v7 }
 0x25e   : > { %6037 = vmatmul.mubr.msk.f32.gmra.mrb[4].mxu1 %vm2215_vm4, %v6035_v2 }
 0x25f   : > { %6319 = vmatprep.mubr.msk.f32.mxu1 %vm2215_vm4, %v6034_v60  ;;  %v7131_v60 = vpop.permute.xlu1 %7130  ;;  %v7146_v22 = vpop.permute.xlu0 %7145 }
 0x260   : > { %v7133_v1 = vunpack.i.h.bf16 %v7131_v60 }
 0x262   : > { %6320 = vmatmul.mubr.msk.f32.vlgmr.msra.gmra.mrb[6].mxu1 %vm2215_vm4, %v6035_v2  ;;  %v7132_v2 = vunpack.i.l.bf16 %v7131_v60  ;;  %v3472_v8 = vsel %vm1756_vm10, %v7133_v1, %v7128_v55  ;;  %v3474_v17 = vsel %vm1756_vm10, %v7123_v57, %v7133_v1 }
 0x263   : > { %6607 = vmatpush1.bf16.msra.mxu1 %v6606_v18  ;;  %2993 = vmatprep.mubr.f32.mxu1 %v7417_v10  ;;  %v7136_v5 = vpop.permute.xlu1 %7135 }
 0x264   : > { %6609 = vmatprep.subr.bf16.mxu1 %v6608_v20  ;;  %v3471_v14 = vsel %vm1756_vm10, %v7132_v2, %v7127_v56  ;;  %v7138_v11 = vunpack.i.h.bf16 %v7136_v5  ;;  %v7137_v13 = vunpack.i.l.bf16 %v7136_v5  ;;  %v3473_v15 = vsel %vm1756_vm10, %v7122_v58, %v7132_v2 }
 0x265   : > { %v6630_v18 = vpack.c.bf16 %v3472_v8, %v3471_v14  ;;  %v7402_v8 = vld [vmem:[%s7503_s22] sm:$0xff] }
 0x266   : > { %6042 = vmatmul.mubr.msk.f32.vlgmr.msra.gmra.mrb[2].mxu1 %vm2215_vm4, %v6040_v21  ;;  %v3655_v25 = vsel %vm1951_vm11, %v7143_v19, %v7138_v11 }
 0x267   : > { %6611 = vmatpush3.bf16.msra.mxu1 %v6608_v20  ;;  %2999 = vmatprep.mubr.f32.mxu1 %v7417_v10  ;;  %v7142_v20 = vunpack.i.l.bf16 %v7141_v7  ;;  %v3832_v39 = vpop.permute.xlu1 %3831  ;;  %v3837_v1 = vpop.permute.xlu0 %3836  ;;  %v7401_v7 = vld [vmem:[%s7503_s22 + $0x8] sm:$0xff] }
 0x268   : > { %6613 = vmatprep.subr.bf16.mxu1 %v6612_v26  ;;  %v7148_v26 = vunpack.i.h.bf16 %v7146_v22  ;;  %v3897_v14 = vrot.slane %v7401_v7, 4 }
 0x269   : > { %v3654_v24 = vsel %vm1951_vm11, %v7142_v20, %v7137_v13 }
 0x26a   : > { %6043 = vmatmul.mubr.msk.f32.gmra.mrb[4].mxu1 %vm2215_vm4, %v6041_v27  ;;  %v6636_v28 = vpack.c.bf16 %v3655_v25, %v3654_v24  ;;  %v3657_v31 = vsel %vm1951_vm11, %v7148_v26, %v7143_v19  ;;  %v3659_v34 = vsel %vm1951_vm11, %v7138_v11, %v7148_v26  ;;  %v3894_v11 = vrot.slane %v7402_v8, 4  ;;  %v7404_v19 = vld [vmem:[%s7503_s22 + $0x20] sm:$0x7f] }
 0x26b   : > { %6326 = vmatprep.mubr.msk.f32.mxu1 %vm2215_vm4, %v6040_v21  ;;  %v6632_v21 = vpack.c.bf16 %v3474_v17, %v3473_v15 }
 0x26e   : > { %6327 = vmatmul.mubr.msk.f32.vlgmr.msra.gmra.mrb[6].mxu1 %vm2215_vm4, %v6041_v27  ;;  %v7147_v27 = vunpack.i.l.bf16 %v7146_v22 }
 0x26f   : > { %6615 = vmatpush1.bf16.msra.mxu1 %v6614_v37  ;;  %3178 = vmatprep.mubr.f32.mxu1 %v7417_v10  ;;  %v6064_v37 = vld [vmem:[%s8853_s4 + $0x80] sm:$0xff] }
 0x270   : > { %6617 = vmatprep.subr.bf16.mxu1 %v6616_v41  ;;  %v3656_v30 = vsel %vm1951_vm11, %v7147_v27, %v7142_v20  ;;  %v3658_v33 = vsel %vm1951_vm11, %v7137_v13, %v7147_v27  ;;  %v7403_v13 = vld [vmem:[%s7503_s22 + $0x18] sm:$0x7f]  ;;  %v3898_v20 = vrot.slane %v7404_v19, 4 }
 0x271   : > { %v6638_v35 = vpack.c.bf16 %v3657_v31, %v3656_v30  ;;  %v6640_v36 = vpack.c.bf16 %v3659_v34, %v3658_v33  ;;  %v3895_v15 = vrot.slane %v7403_v13, 4 }
 0x272   : > { %6048 = vmatmul.mubr.msk.f32.vlgmr.msra.gmra.mrb[2].mxu1 %vm2215_vm4, %v6046_v42  ;;  %v3899_v27 = vsel %vm3893_vm14, %v3897_v14, %v3898_v20 }
 0x273   : > { %6619 = vmatpush3.bf16.msra.mxu1 %v6616_v41  ;;  %3184 = vmatprep.mubr.f32.mxu1 %v7417_v10 }
 0x274   : > { %6621 = vmatprep.subr.bf16.mxu1 %v6620_v47 }
 0x276   : > { %6049 = vmatmul.mubr.msk.f32.gmra.mrb[4].mxu1 %vm2215_vm4, %v6047_v48 }
 0x277   : > { %6333 = vmatprep.mubr.msk.f32.mxu1 %vm2215_vm4, %v6046_v42 }
 0x27a   : > { %6334 = vmatmul.mubr.msk.f32.vlgmr.msra.gmra.mrb[6].mxu1 %vm2215_vm4, %v6047_v48 }
 0x27b   : > { %6623 = vmatpush1.bf16.msra.mxu1 %v6622_v59  ;;  %3363 = vmatprep.mubr.f32.mxu1 %v7417_v10 }
 0x27c   : > { %6625 = vmatprep.subr.bf16.mxu1 %v6624_v61 }
 0x27e   : > { %6054 = vmatmul.mubr.msk.f32.vlgmr.msra.gmra.mrb[2].mxu1 %vm2215_vm4, %v6052_v62 }
 0x27f   : > { %6627 = vmatpush3.bf16.msra.mxu1 %v6624_v61  ;;  %3369 = vmatprep.mubr.f32.mxu1 %v7417_v10 }
 0x280   : > { %6629 = vmatprep.subr.bf16.mxu1 %v6628_v3 }
 0x282   : > { %6055 = vmatmul.mubr.msk.f32.gmra.mrb[4].mxu1 %vm2215_vm4, %v6053_v4 }
 0x283   : > { %6340 = vmatprep.mubr.msk.f32.mxu1 %vm2215_vm4, %v6052_v62 }
 0x286   : > { %6341 = vmatmul.mubr.msk.f32.vlgmr.msra.gmra.mrb[6].mxu1 %vm2215_vm4, %v6053_v4 }
 0x287   : > { %6631 = vmatpush1.bf16.msra.mxu1 %v6630_v18  ;;  %3548 = vmatprep.mubr.f32.mxu1 %v7417_v10 }
 0x288   : > { %6633 = vmatprep.subr.bf16.mxu1 %v6632_v21 }
 0x28a   : > { %6060 = vmatmul.mubr.msk.f32.vlgmr.msra.gmra.mrb[2].mxu1 %vm2215_vm4, %v6058_v23 }
 0x28b   : > { %6635 = vmatpush3.bf16.msra.mxu1 %v6632_v21  ;;  %3554 = vmatprep.mubr.f32.mxu1 %v7417_v10 }
 0x28c   : > { %6637 = vmatprep.subr.bf16.mxu1 %v6636_v28 }
 0x28e   : > { %6061 = vmatmul.mubr.msk.f32.gmra.mrb[4].mxu1 %vm2215_vm4, %v6059_v29 }
 0x28f   : > { %6347 = vmatprep.mubr.msk.f32.mxu1 %vm2215_vm4, %v6058_v23  ;;  %v3896_v23 = vsel %vm3893_vm14, %v3894_v11, %v3895_v15 }
 0x292   : > { %6348 = vmatmul.mubr.msk.f32.vlgmr.msra.gmra.mrb[6].mxu1 %vm2215_vm4, %v6059_v29 }
 0x293   : > { %6639 = vmatpush1.bf16.msra.mxu1 %v6638_v35  ;;  %3733 = vmatprep.mubr.f32.mxu1 %v7417_v10 }
 0x294   : > { %6641 = vmatprep.subr.bf16.mxu1 %v6640_v36 }
 0x296   : > { %6066 = vmatmul.mubr.msk.f32.vlgmr.msra.gmra.mrb[2].mxu1 %vm2215_vm4, %v6064_v37 }
 0x297   : > { %6643 = vmatpush3.bf16.msra.mxu1 %v6640_v36  ;;  %3739 = vmatprep.mubr.f32.mxu1 %v7417_v10 }
 0x29a   : > { %6067 = vmatmul.mubr.msk.f32.gmra.mrb[4].mxu1 %vm2215_vm4, %v6065_v38 }
 0x29b   : > { %6354 = vmatprep.mubr.msk.f32.mxu1 %vm2215_vm4, %v6064_v37  ;;  %v7405_v37 = vld [vmem:[%s7503_s22 + $0x10] sm:$0xff] }
 0x29e   : > { %6355 = vmatmul.mubr.msk.f32.vlgmr.msra.gmra.mrb[6].mxu1 %vm2215_vm4, %v6065_v38  ;;  %v3900_v38 = vrot.slane %v7405_v37, 4  ;;  %vm3940_vm4 = vcmask 64512  }
 0x369   : > { %v3735_v40 = vpop.f32.mrb[2].mxu1 }
 0x36a   : > { %v3839_v41 = vadd.f32 %v3832_v39, %v3735_v40  ;;  %v3737_v42 = vpop.f32.mrb[3].mxu1 }
 0x36b   : > { %v3840_v43 = vadd.f32 %v3832_v39, %v3737_v42  ;;  %v3912_v42 = vld [vmem:[%s8855_s6] sm:$0xff] }
 0x36c   : > { %vm3845_vm5 = vcmp.ge.f32.partialorder %v3839_v41, 0.0  ;;  %v3851_v44 = vmul.f32 0.1, %v3839_v41 }
 0x36d   : > { %vm3846_vm12 = vcmp.ge.f32.partialorder %v3840_v43, 0.0  ;;  %v3852_v45 = vmul.f32 0.1, %v3840_v43  ;;  %v3741_v46 = vpop.f32.mrb[4].mxu1 }
 0x36e   : > { %v3857_v47 = vsel %vm3845_vm5, %v3839_v41, %v3851_v44  ;;  %v3743_v48 = vpop.f32.mrb[5].mxu1  ;;  %v3842_v2 = vadd.f32 %v3837_v1, %v3741_v46 }
 0x36f   : > { %v3863_v49 = vmul.f32 %v3857_v47, %v7883_v6  ;;  %v3858_v50 = vsel %vm3846_vm12, %v3840_v43, %v3852_v45  ;;  %v3843_v3 = vadd.f32 %v3837_v1, %v3743_v48  ;;  %v3913_v47 = vld [vmem:[%s8855_s6 + $0x8] sm:$0xff] }
 0x370   : > { %v3864_v51 = vmul.f32 %v3858_v50, %v7887_v12  ;;  %v3854_v5 = vmul.f32 0.1, %v3842_v2  ;;  %vm3848_vm15 = vcmp.ge.f32.partialorder %v3842_v2, 0.0 }
 0x371   : > { %v6070_v52 = vmul.f32 -1.442695, %v3863_v49  ;;  %v6356_v53 = vpop.f32.mrb[6].mxu1  ;;  %v3855_v17 = vmul.f32 0.1, %v3843_v3  ;;  %vm3849_vm0 = vcmp.ge.f32.partialorder %v3843_v3, 0.0 }
 0x372   : > { %v6071_v54 = vmul.f32 -1.442695, %v3864_v51  ;;  %v3812_v55 = vpop.f32.mrb[7].mxu1  ;;  %v3860_v22 = vsel %vm3848_vm15, %v3842_v2, %v3854_v5  ;;  %v3844_v26 = vadd.f32 %v6356_v53, %v3837_v1  ;;  %v3914_v51 = vld [vmem:[%s8855_s6 + $0x10] sm:$0xff]  ;;  %v8205_v53 = vpop.permute.xlu1 %3922 }
 0x373   : > { %7389 = vpow2.f32 %v6070_v52  ;;  %v3841_v56 = vadd.f32 %v3832_v39, %v3812_v55  ;;  %v3861_v25 = vsel %vm3849_vm0, %v3843_v3, %v3855_v17  ;;  %v3866_v30 = vmul.f32 %v3860_v22, %v7883_v6  ;;  %v7406_v39 = vld [vmem:[%s7503_s22 + $0x28] sm:$0x7f]  ;;  %v3915_v52 = vld [vmem:[%s8855_s6 + $0x18] sm:$0xff] }
 0x374   : > { %7391 = vpow2.f32 %v6071_v54  ;;  %v3867_v33 = vmul.f32 %v3861_v25, %v7887_v12  ;;  %v3856_v35 = vmul.f32 0.1, %v3844_v26  ;;  %v3901_v40 = vrot.slane %v7406_v39, 4 }
 0x375   : > { %vm3847_vm13 = vcmp.ge.f32.partialorder %v3841_v56, 0.0  ;;  %v3853_v57 = vmul.f32 0.1, %v3841_v56  ;;  %vm3850_vm2 = vcmp.ge.f32.partialorder %v3844_v26, 0.0 }
 0x376   : > { %v3862_v44 = vsel %vm3850_vm2, %v3844_v26, %v3856_v35  ;;  %v3902_v45 = vsel %vm3893_vm14, %v3900_v38, %v3901_v40  ;;  %v3933_v7 = vpop.permute.xlu1 %3932 }
 0x377   : > { %v3859_v58 = vsel %vm3847_vm13, %v3841_v56, %v3853_v57  ;;  %v3868_v48 = vmul.f32 %v3862_v44, %v7885_v9 }
 0x378   : > { %v3865_v59 = vmul.f32 %v3859_v58, %v7885_v9 }
 0x37a   : > { %v6072_v60 = vmul.f32 -1.442695, %v3865_v59  ;;  %v3928_v59 = vpop.permute.xlu0 %3927 }
 0x37c   : > { %7393 = vpow2.f32 %v6072_v60 }
 0x37d   : > { %v7390_v61 = vpop.eup %7389 }
 0x37e   : > { %v7392_v62 = vpop.eup %7391  ;;  %v3878_v63 = vadd.f32 1.0, %v7390_v61  ;;  %v3938_v22 = vpop.permute.xlu0 %3937 }
 0x37f   : > { %v3879_v0 = vadd.f32 1.0, %v7392_v62 }
 0x380   : > { %7395 = vrcp.f32 %v3878_v63 }
 0x381   : > { %7397 = vrcp.f32 %v3879_v0 }
 0x386   : > { %v7394_v4 = vpop.eup %7393 }
 0x387   : > { %v3880_v18 = vadd.f32 1.0, %v7394_v4 }
 0x389   : > { %7399 = vrcp.f32 %v3880_v18 }
 0x38a   : > { %v7396_v21 = vpop.eup %7395 }
 0x38b   : > { %v7398_v24 = vpop.eup %7397  ;;  %v3887_v28 = vmul.f32 2.0, %v7396_v21 }
 0x38c   : > { %v3888_v29 = vmul.f32 2.0, %v7398_v24 }
 0x38d   : > { %v3906_v31 = vmul.f32 %v3896_v23, %v3887_v28 }
 0x38e   : > { %v3907_v34 = vmul.f32 %v3899_v27, %v3888_v29 }
 0x38f   : > { %v3909_v36 = vadd.f32 %v3906_v31, %v3866_v30 }
 0x390   : > { %v3910_v41 = vadd.f32 %v3907_v34, %v3867_v33 }
 0x392   : > { %3953 = vmatprep.subr.mxu0 %v3910_v41 }
 0x393   : > { %v7400_v43 = vpop.eup %7399  ;;  %3954 = vmatpush1.msra.mxu0 %v3909_v36 }
 0x394   : > { %6073 = vmatmul.mubr.msk.f32.vlgmr.msra.gmra.mrb[4].mxu0 %vm3940_vm4, %v3912_v42  ;;  %v3889_v46 = vmul.f32 2.0, %v7400_v43 }
 0x395   : > { %4023 = vmatprep.mubr.f32.mxu0 %v7417_v10 }
 0x396   : > { %v3908_v49 = vmul.f32 %v3902_v45, %v3889_v46 }
 0x398   : > { %6074 = vmatmul.mubr.msk.f32.gmra.mrb[6].mxu0 %vm3940_vm4, %v3913_v47  ;;  %v3911_v50 = vadd.f32 %v3908_v49, %v3868_v48 }
 0x399   : > { %4029 = vmatprep.mubr.f32.mxu0 %v7417_v10 }
 0x39a   : > { %6357 = vmatprep.subr.mxu0 %v3911_v50 }
 0x39b   : > { %6358 = vmatpush3.msra.mxu0 %v3911_v50 }
 0x39c   : > { %6075 = vmatmul.mubr.msk.f32.gmra.mrb[8].mxu0 %vm3940_vm4, %v3914_v51 }
 0x39d   : > { %4035 = vmatprep.mubr.f32.mxu0 %v7417_v10 }
 0x3a0   : > { %6076 = vmatmul.mubr.msk.f32.gmra.mrb[10].mxu0 %vm3940_vm4, %v3915_v52 }
 0x3a1   : > { %6359 = vmatprep.mubr.msk.f32.mxu0 %vm3940_vm4, %v3912_v42 }
 0x3a4   : > { %6360 = vmatmul.mubr.msk.f32.vlgmr.msra.gmra.mrb[12].mxu0 %vm3940_vm4, %v3913_v47 }
 0x3a5   : > { %6362 = vmatprep.mubr.msk.f32.mxu0 %vm3940_vm4, %v3914_v51 }
 0x3a8   : > { %6363 = vmatmul.mubr.msk.f32.gmra.mrb[14].mxu0 %vm3940_vm4, %v3915_v52 }
 0x3a9   : > { %4294 = vmatprep.mubr.f32.mxu0 %v7417_v10 }
 0x467   : > { %v4019_v54 = vpop.f32.mrb[4].mxu0 }
 0x468   : > { %v4020_v55 = vadd.f32 %v4019_v54, %v8205_v53  ;;  %v4021_v56 = vpop.f32.mrb[5].mxu0 }
 0x469   : > { %v4022_v57 = vadd.f32 %v4021_v56, %v8205_v53 }
 0x46a   : > { %vm4127_vm5 = vcmp.ge.f32.partialorder %v4020_v55, 0.0  ;;  %v4139_v58 = vmul.f32 0.1, %v4020_v55 }
 0x46b   : > { %vm4128_vm12 = vcmp.ge.f32.partialorder %v4022_v57, 0.0  ;;  %v4140_v60 = vmul.f32 0.1, %v4022_v57  ;;  %v4025_v61 = vpop.f32.mrb[6].mxu0 }
 0x46c   : > { %v4151_v62 = vsel %vm4127_vm5, %v4020_v55, %v4139_v58  ;;  %v4026_v63 = vadd.f32 %v4025_v61, %v3928_v59  ;;  %v4027_v0 = vpop.f32.mrb[7].mxu0 }
 0x46d   : > { %v8216_v1 = vmul.f32 %v4151_v62, %v7883_v6  ;;  %v4152_v2 = vsel %vm4128_vm12, %v4022_v57, %v4140_v60  ;;  %v4028_v3 = vadd.f32 %v4027_v0, %v3928_v59 }
 0x46e   : > { %v8219_v4 = vmul.f32 %v4152_v2, %v7887_v12  ;;  %vm4130_vm13 = vcmp.ge.f32.partialorder %v4026_v63, 0.0  ;;  %v4142_v5 = vmul.f32 0.1, %v4026_v63  ;;  %v7426_v2 = vmov 0.0|0.0  }
 0x46f   : > { %4175 = vst [vmem:[%s8213_s24] sm:$0xff] %v8216_v1  ;;  %vm4131_vm14 = vcmp.ge.f32.partialorder %v4028_v3, 0.0  ;;  %v4143_v14 = vmul.f32 0.1, %v4028_v3  ;;  %v4031_v8 = vpop.f32.mrb[8].mxu0  ;;  %6694 = vmatprep.subr.bf16.mxu1 %v7426_v2 }
 0x470   : > { %4176 = vst [vmem:[%s8213_s24 + $0x8] sm:$0xff] %v8219_v4  ;;  %v4154_v11 = vsel %vm4130_vm13, %v4026_v63, %v4142_v5  ;;  %v4032_v13 = vadd.f32 %v4031_v8, %v3933_v7  ;;  %v4033_v15 = vpop.f32.mrb[9].mxu0 }
 0x471   : > { %v8226_v17 = vmul.f32 %v4154_v11, %v7883_v6  ;;  %v4155_v18 = vsel %vm4131_vm14, %v4028_v3, %v4143_v14  ;;  %v4034_v19 = vadd.f32 %v4033_v15, %v3933_v7 }
 0x472   : > { %v8229_v20 = vmul.f32 %v4155_v18, %v7887_v12  ;;  %vm4133_vm15 = vcmp.ge.f32.partialorder %v4032_v13, 0.0  ;;  %v4145_v21 = vmul.f32 0.1, %v4032_v13 }
 0x473   : > { %4178 = vst [vmem:[%s8213_s24 + $0x18] sm:$0xff] %v8226_v17  ;;  %vm4134_vm0 = vcmp.ge.f32.partialorder %v4034_v19, 0.0  ;;  %v4146_v23 = vmul.f32 0.1, %v4034_v19  ;;  %v4037_v24 = vpop.f32.mrb[10].mxu0  ;;  %v8235_v25 = vpack.i.bf16 %v8226_v17, %v8216_v1  ;;  %v6660_v5 = vpack.c.bf16 %v8226_v17, %v8216_v1 }
 0x474   : > { %4179 = vst [vmem:[%s8213_s24 + $0x20] sm:$0xff] %v8229_v20  ;;  %v4157_v26 = vsel %vm4133_vm15, %v4032_v13, %v4145_v21  ;;  %v4038_v27 = vadd.f32 %v4037_v24, %v3938_v22  ;;  %v4039_v28 = vpop.f32.mrb[11].mxu0  ;;  %v8241_v29 = vpack.i.bf16 %v8229_v20, %v8219_v4  ;;  %v6658_v3 = vpack.c.bf16 %v8229_v20, %v8219_v4  ;;  %v5810_v13 = vld [vmem:[%s8858_s9] sm:$0x3] }
 0x475   : > { %v8244_v30 = vmul.f32 %v4157_v26, %v7883_v6  ;;  %v4158_v31 = vsel %vm4134_vm0, %v4034_v19, %v4146_v23  ;;  %v4040_v33 = vadd.f32 %v4039_v28, %v3938_v22  ;;  %7150 = vrot.lane.b32.xlu1 %v8235_v25, %s7415_s23  ;;  %vm7427_vm15 = vmmov 0  }
 0x476   : > { %v8249_v34 = vmul.f32 %v4158_v31, %v7887_v12  ;;  %vm4136_vm2 = vcmp.ge.f32.partialorder %v4038_v27, 0.0  ;;  %v4148_v35 = vmul.f32 0.1, %v4038_v27  ;;  %7155 = vrot.lane.b32.xlu0 %v8241_v29, %s7415_s23  ;;  %6406 = vmatprep.mubr.msk.f32.mxu1 %vm7427_vm15, %v7417_v10  ;;  %vm4226_vm0 = vcmask 261120  }
 0x477   : > { %4181 = vst [vmem:[%s8213_s24 + $0x30] sm:$0xff] %v8244_v30  ;;  %vm4137_vm4 = vcmp.ge.f32.partialorder %v4040_v33, 0.0  ;;  %v4149_v36 = vmul.f32 0.1, %v4040_v33  ;;  %v6361_v37 = vpop.f32.mrb[12].mxu0 }
 0x478   : > { %4182 = vst [vmem:[%s8213_s24 + $0x38] sm:$0xff] %v8249_v34  ;;  %v4160_v38 = vsel %vm4136_vm2, %v4038_v27, %v4148_v35  ;;  %v4114_v39 = vadd.f32 %v6361_v37, %v3928_v59  ;;  %v4108_v40 = vpop.f32.mrb[13].mxu0 }
 0x479   : > { %v8258_v41 = vmul.f32 %v4160_v38, %v7883_v6  ;;  %v4161_v42 = vsel %vm4137_vm4, %v4040_v33, %v4149_v36  ;;  %v4109_v43 = vadd.f32 %v4108_v40, %v8205_v53 }
 0x47a   : > { %v8262_v44 = vmul.f32 %v4161_v42, %v7887_v12  ;;  %vm4132_vm5 = vcmp.ge.f32.partialorder %v4114_v39, 0.0  ;;  %v4144_v45 = vmul.f32 0.1, %v4114_v39 }
 0x47b   : > { %4184 = vst [vmem:[%s8213_s24 + $0x48] sm:$0xff] %v8258_v41  ;;  %vm4129_vm12 = vcmp.ge.f32.partialorder %v4109_v43, 0.0  ;;  %v4141_v46 = vmul.f32 0.1, %v4109_v43  ;;  %v6364_v47 = vpop.f32.mrb[14].mxu0  ;;  %v8268_v48 = vpack.i.bf16 %v8258_v41, %v8244_v30  ;;  %v6664_v14 = vpack.c.bf16 %v8258_v41, %v8244_v30 }
 0x47c   : > { %4185 = vst [vmem:[%s8213_s24 + $0x50] sm:$0xff] %v8262_v44  ;;  %v4156_v49 = vsel %vm4132_vm5, %v4114_v39, %v4144_v45  ;;  %v4124_v50 = vadd.f32 %v6364_v47, %v3938_v22  ;;  %v4118_v51 = vpop.f32.mrb[15].mxu0  ;;  %v8274_v52 = vpack.i.bf16 %v8262_v44, %v8249_v34 }
 0x47d   : > { %v8277_v53 = vmul.f32 %v4156_v49, %v7885_v9  ;;  %v4153_v54 = vsel %vm4129_vm12, %v4109_v43, %v4141_v46  ;;  %v4119_v55 = vadd.f32 %v4118_v51, %v3933_v7  ;;  %7160 = vrot.lane.b32.xlu0 %v8268_v48, %s7415_s23  ;;  %v6662_v7 = vpack.c.bf16 %v8262_v44, %v8249_v34 }
 0x47e   : > { %v8282_v56 = vmul.f32 %v4153_v54, %v7885_v9  ;;  %vm4138_vm13 = vcmp.ge.f32.partialorder %v4124_v50, 0.0  ;;  %v4150_v57 = vmul.f32 0.1, %v4124_v50 }
 0x47f   : > { %4180 = vst [vmem:[%s8213_s24 + $0x28] sm:$0xff] %v8277_v53  ;;  %vm4135_vm14 = vcmp.ge.f32.partialorder %v4119_v55, 0.0  ;;  %v4147_v58 = vmul.f32 0.1, %v4119_v55 }
 0x480   : > { %4177 = vst [vmem:[%s8213_s24 + $0x10] sm:$0xff] %v8282_v56  ;;  %v4162_v59 = vsel %vm4138_vm13, %v4124_v50, %v4150_v57  ;;  %v7164_v60 = vpack.i.bf16 %v8277_v53, %v8282_v56  ;;  %v6667_v8 = vpack.c.bf16 %v8277_v53, %v8282_v56 }
 0x481   : > { %v8291_v61 = vmul.f32 %v4162_v59, %v7885_v9  ;;  %v4159_v62 = vsel %vm4135_vm14, %v4119_v55, %v4147_v58 }
 0x482   : > { %v8294_v63 = vmul.f32 %v4159_v62, %v7885_v9  ;;  %7165 = vrot.lane.b32.xlu1 %v7164_v60, %s7415_s23  ;;  %v4225_v62 = vld [vmem:[%s8857_s8] sm:$0x3] }
 0x483   : > { %4186 = vst [vmem:[%s8213_s24 + $0x58] sm:$0xff] %v8291_v61 }
 0x484   : > { %4183 = vst [vmem:[%s8213_s24 + $0x40] sm:$0xff] %v8294_v63  ;;  %v7174_v0 = vpack.i.bf16 %v8291_v61, %v8294_v63  ;;  %v6670_v11 = vpack.c.bf16 %v8291_v61, %v8294_v63 }
 0x486   : > { %7175 = vrot.lane.b32.xlu0 %v7174_v0, %s7415_s23  ;;  %7170 = vrot.lane.b32.xlu1 %v8274_v52, %s7415_s23  ;;  %s8867_s23 = smov 110  }
 0x48a   : > { %7185 = vrot.lane.b32.xlu0 %v8241_v29, %s7416_s26  ;;  %7180 = vrot.lane.b32.xlu1 %v8235_v25, %s7416_s26 }
 0x48e   : > { %7195 = vrot.lane.b32.xlu0 %v8268_v48, %s7416_s26  ;;  %7190 = vrot.lane.b32.xlu1 %v7164_v60, %s7416_s26 }
 0x492   : > { %7210 = vrot.lane.b32.xlu0 %v8241_v29, %s7418_s27  ;;  %7200 = vrot.lane.b32.xlu1 %v8274_v52, %s7416_s26 }
 0x496   : > { %7220 = vrot.lane.b32.xlu0 %v8268_v48, %s7418_s27  ;;  %7205 = vrot.lane.b32.xlu1 %v8235_v25, %s7418_s27 }
 0x49a   : > { %7235 = vrot.lane.b32.xlu0 %v8241_v29, %s7419_s28  ;;  %7215 = vrot.lane.b32.xlu1 %v7164_v60, %s7418_s27 }
 0x49e   : > { %7245 = vrot.lane.b32.xlu0 %v8268_v48, %s7419_s28  ;;  %7225 = vrot.lane.b32.xlu1 %v8274_v52, %s7418_s27 }
 0x4a2   : > { %7260 = vrot.lane.b32.xlu0 %v7174_v0, %s7416_s26  ;;  %7230 = vrot.lane.b32.xlu1 %v8235_v25, %s7419_s28  ;;  %s8868_s26 = smov 109  }
 0x4a6   : > { %7265 = vrot.lane.b32.xlu0 %v7164_v60, %s7420_s29  ;;  %7240 = vrot.lane.b32.xlu1 %v7164_v60, %s7419_s28 }
 0x4aa   : > { %7275 = vrot.lane.b32.xlu0 %v8274_v52, %s7420_s29  ;;  %7250 = vrot.lane.b32.xlu1 %v8274_v52, %s7419_s28 }
 0x4ae   : > { %7280 = vrot.lane.b32.xlu0 %v8268_v48, %s7420_s29  ;;  %7255 = vrot.lane.b32.xlu1 %v8241_v29, %s7420_s29 }
 0x4b2   : > { %7290 = vrot.lane.b32.xlu0 %v7174_v0, %s7418_s27  ;;  %7270 = vrot.lane.b32.xlu1 %v8235_v25, %s7420_s29 }
 0x4b6   : > { %7295 = vrot.lane.b32.xlu0 %v7164_v60, %s7421_s30  ;;  %7285 = vrot.lane.b32.xlu1 %v8241_v29, %s7421_s30 }
 0x4ba   : > { %7305 = vrot.lane.b32.xlu0 %v7174_v0, %s7419_s28  ;;  %7300 = vrot.lane.b32.xlu1 %v8235_v25, %s7421_s30 }
 0x4be   : > { %7310 = vrot.lane.b32.xlu0 %v8274_v52, %s7421_s30  ;;  %7320 = vrot.lane.b32.xlu1 %v8241_v29, %s8867_s23 }
 0x4c2   : > { %7315 = vrot.lane.b32.xlu0 %v8268_v48, %s7421_s30  ;;  %7330 = vrot.lane.b32.xlu1 %v7174_v0, %s7420_s29 }
 0x4c6   : > { %7325 = vrot.lane.b32.xlu0 %v7164_v60, %s8867_s23  ;;  %7335 = vrot.lane.b32.xlu1 %v8235_v25, %s8867_s23 }
 0x4ca   : > { %7340 = vrot.lane.b32.xlu0 %v8274_v52, %s8867_s23  ;;  %7350 = vrot.lane.b32.xlu1 %v7174_v0, %s7421_s30  ;;  %s6884_s30 = smul.u32 6, %s8870_s18 }
 0x4cc   : > { %s399_s14 = scalar_lea.vmem %s8860_s11, %s6884_s30 }
 0x4ce   : > { %7345 = vrot.lane.b32.xlu0 %v8268_v48, %s8867_s23  ;;  %7355 = vrot.lane.b32.xlu1 %v8241_v29, %s8868_s26 }
 0x4d2   : > { %7360 = vrot.lane.b32.xlu0 %v7164_v60, %s8868_s26  ;;  %7365 = vrot.lane.b32.xlu1 %v7174_v0, %s8867_s23 }
 0x4d6   : > { %7375 = vrot.lane.b32.xlu0 %v8274_v52, %s8868_s26  ;;  %7370 = vrot.lane.b32.xlu1 %v8235_v25, %s8868_s26 }
 0x4da   : > { %7385 = vrot.lane.b32.xlu0 %v8268_v48, %s8868_s26  ;;  %7380 = vrot.lane.b32.xlu1 %v7174_v0, %s8868_s26 }
 0x4de   : > { %5813 = vperm.xlu1 %7028, %v5810_v13  }
 0x4e7   : > { %v7151_v15 = vpop.permute.xlu1 %7150 }
 0x4e8   : > { %v7153_v18 = vunpack.i.h.bf16 %v7151_v15  ;;  %v7152_v19 = vunpack.i.l.bf16 %v7151_v15  ;;  %v7156_v21 = vpop.permute.xlu0 %7155 }
 0x4e9   : > { %v7158_v22 = vunpack.i.h.bf16 %v7156_v21  ;;  %v7157_v23 = vunpack.i.l.bf16 %v7156_v21 }
 0x4eb   : > { %v4217_v24 = vsel %vm424_vm1, %v7152_v19, %v7157_v23  ;;  %v4218_v25 = vsel %vm424_vm1, %v7153_v18, %v7158_v22 }
 0x4ec   : > { %v6644_v26 = vpack.c.bf16 %v4218_v25, %v4217_v24 }
 0x4ee   : > { %6645 = vmatprep.subr.bf16.mxu0 %v6644_v26 }
 0x4ef   : > { %v7161_v27 = vpop.permute.xlu0 %7160 }
 0x4f0   : > { %v7163_v36 = vunpack.i.h.bf16 %v7161_v27  ;;  %v7162_v37 = vunpack.i.l.bf16 %v7161_v27 }
 0x4f4   : > { %v7166_v28 = vpop.permute.xlu1 %7165 }
 0x4f5   : > { %v7168_v29 = vunpack.i.h.bf16 %v7166_v28  ;;  %v7167_v31 = vunpack.i.l.bf16 %v7166_v28 }
 0x4f7   : > { %v4222_v33 = vsel %vm424_vm1, %v7168_v29, %v7153_v18  ;;  %v4221_v35 = vsel %vm424_vm1, %v7167_v31, %v7152_v19  ;;  %v4214_v57 = vsel %vm424_vm1, %v7158_v22, %v7168_v29  ;;  %v4213_v58 = vsel %vm424_vm1, %v7157_v23, %v7167_v31  ;;  %v6081_v31 = vld [vmem:[%s8857_s8 + $0x8] sm:$0x3] }
 0x4f8   : > { %v6646_v38 = vpack.c.bf16 %v4222_v33, %v4221_v35  ;;  %v7176_v39 = vpop.permute.xlu0 %7175  ;;  %v7171_v40 = vpop.permute.xlu1 %7170  ;;  %v6653_v0 = vpack.c.bf16 %v4214_v57, %v4213_v58 }
 0x4f9   : > { %v7178_v42 = vunpack.i.h.bf16 %v7176_v39  ;;  %v7177_v43 = vunpack.i.l.bf16 %v7176_v39  ;;  %v7173_v45 = vunpack.i.h.bf16 %v7171_v40  ;;  %v7172_v46 = vunpack.i.l.bf16 %v7171_v40 }
 0x4fa   : > { %6647 = vmatpush1.bf16.msra.mxu0 %v6646_v38 }
 0x4fb   : > { %v4224_v47 = vsel %vm424_vm1, %v7178_v42, %v7163_v36  ;;  %v4223_v48 = vsel %vm424_vm1, %v7177_v43, %v7162_v37  ;;  %v4219_v51 = vsel %vm424_vm1, %v7162_v37, %v7172_v46  ;;  %v4220_v52 = vsel %vm424_vm1, %v7163_v36, %v7173_v45 }
 0x4fc   : > { %v8406_v49 = vpop.permute.xlu0 %7185  ;;  %v8408_v50 = vpop.permute.xlu1 %7180  ;;  %v6650_v54 = vpack.c.bf16 %v4224_v47, %v4223_v48  ;;  %v6648_v55 = vpack.c.bf16 %v4220_v52, %v4219_v51  ;;  %v4216_v13 = vsel %vm424_vm1, %v7173_v45, %v7178_v42  ;;  %v4215_v15 = vsel %vm424_vm1, %v7172_v46, %v7177_v43 }
 0x4fd   : > { %v6656_v21 = vpack.c.bf16 %v4216_v13, %v4215_v15  ;;  %v7188_v4 = vunpack.i.h.bf16 %v8406_v49  ;;  %v7187_v20 = vunpack.i.l.bf16 %v8406_v49  ;;  %v7183_v34 = vunpack.i.h.bf16 %v8408_v50  ;;  %v6086_v13 = vld [vmem:[%s8857_s8 + $0x2] sm:$0x3] }
 0x4fe   : > { %6649 = vmatprep.subr.bf16.mxu0 %v6648_v55  ;;  %v7182_v44 = vunpack.i.l.bf16 %v8408_v50 }
 0x4ff   : > { %6651 = vmatpush1.bf16.msra.mxu0 %v6650_v54  ;;  %v4544_v38 = vsel %vm781_vm3, %v7183_v34, %v7188_v4 }
 0x500   : > { %v8418_v59 = vpop.permute.xlu0 %7195  ;;  %v8420_v60 = vpop.permute.xlu1 %7190  ;;  %6652 = vmatprep.subr.bf16.mxu0 %v7426_v2 }
 0x501   : > { %v7193_v33 = vunpack.i.h.bf16 %v8420_v60  ;;  %v7192_v35 = vunpack.i.l.bf16 %v8420_v60  ;;  %v7198_v39 = vunpack.i.h.bf16 %v8418_v59  ;;  %v7197_v40 = vunpack.i.l.bf16 %v8418_v59 }
 0x502   : > { %6082 = vmatmul.mubr.msk.f32.vlgmr.msra.gmra.mrb[16].mxu0 %vm4226_vm0, %v4225_v62 }
 0x503   : > { %6654 = vmatpush3.bf16.msra.mxu0 %v6653_v0  ;;  %6373 = vmatprep.mubr.msk.f32.mxu0 %vm7427_vm15, %v7417_v10  ;;  %v4547_v42 = vsel %vm781_vm3, %v7192_v35, %v7182_v44  ;;  %v4548_v43 = vsel %vm781_vm3, %v7193_v33, %v7183_v34  ;;  %v4540_v61 = vsel %vm781_vm3, %v7188_v4, %v7193_v33 }
 0x504   : > { %v8431_v18 = vpop.permute.xlu0 %7210  ;;  %v8433_v19 = vpop.permute.xlu1 %7200  ;;  %6655 = vmatprep.subr.bf16.mxu0 %v7426_v2  ;;  %v6674_v49 = vpack.c.bf16 %v4548_v43, %v4547_v42  ;;  %v4539_v63 = vsel %vm781_vm3, %v7187_v20, %v7192_v35 }
 0x505   : > { %v7213_v26 = vunpack.i.h.bf16 %v8431_v18  ;;  %v7212_v27 = vunpack.i.l.bf16 %v8431_v18  ;;  %v7203_v36 = vunpack.i.h.bf16 %v8433_v19  ;;  %v7202_v37 = vunpack.i.l.bf16 %v8433_v19 }
 0x506   : > { %v6681_v15 = vpack.c.bf16 %v4540_v61, %v4539_v63 }
 0x507   : > { %6657 = vmatpush3.bf16.msra.mxu0 %v6656_v21  ;;  %v4546_v48 = vsel %vm781_vm3, %v7198_v39, %v7203_v36 }
 0x508   : > { %v8438_v22 = vpop.permute.xlu0 %7220  ;;  %v8440_v23 = vpop.permute.xlu1 %7205  ;;  %6659 = vmatprep.subr.bf16.mxu0 %v6658_v3 }
 0x509   : > { %v7208_v51 = vunpack.i.h.bf16 %v8440_v23  ;;  %v7207_v52 = vunpack.i.l.bf16 %v8440_v23  ;;  %v7223_v21 = vunpack.i.h.bf16 %v8438_v22  ;;  %v7222_v23 = vunpack.i.l.bf16 %v8438_v22 }
 0x50a   : > { %6374 = vmatmul.mubr.msk.f32.vlgmr.msra.gmra.mrb[18].mxu0 %vm4226_vm0, %v4225_v62 }
 0x50b   : > { %6661 = vmatpush1.bf16.msra.mxu0 %v6660_v5  ;;  %4438 = vmatprep.mubr.f32.mxu0 %v7417_v10  ;;  %v4728_v62 = vsel %vm976_vm6, %v7207_v52, %v7212_v27  ;;  %v4729_v0 = vsel %vm976_vm6, %v7208_v51, %v7213_v26 }
 0x50c   : > { %v8446_v24 = vpop.permute.xlu0 %7235  ;;  %v8448_v25 = vpop.permute.xlu1 %7215  ;;  %6663 = vmatprep.subr.bf16.mxu0 %v6662_v7  ;;  %v6686_v18 = vpack.c.bf16 %v4729_v0, %v4728_v62 }
 0x50d   : > { %v7218_v28 = vunpack.i.h.bf16 %v8448_v25  ;;  %v7217_v29 = vunpack.i.l.bf16 %v8448_v25  ;;  %v7238_v22 = vunpack.i.h.bf16 %v8446_v24 }
 0x50f   : > { %v4725_v1 = vsel %vm976_vm6, %v7213_v26, %v7218_v28  ;;  %v4724_v17 = vsel %vm976_vm6, %v7212_v27, %v7217_v29  ;;  %6665 = vmatpush1.bf16.msra.mxu0 %v6664_v14  ;;  %v4543_v14 = vsel %vm781_vm3, %v7182_v44, %v7187_v20  ;;  %v7237_v44 = vunpack.i.l.bf16 %v8446_v24 }
 0x510   : > { %v6695_v3 = vpack.c.bf16 %v4725_v1, %v4724_v17  ;;  %v8477_v5 = vpop.permute.xlu0 %7245  ;;  %v8479_v7 = vpop.permute.xlu1 %7225  ;;  %6666 = vmatprep.subr.bf16.mxu0 %v7426_v2  ;;  %v6672_v45 = vpack.c.bf16 %v4544_v38, %v4543_v14  ;;  %v4733_v33 = vsel %vm976_vm6, %v7218_v28, %v7208_v51 }
 0x511   : > { %v7227_v19 = vunpack.i.l.bf16 %v8479_v7  ;;  %v7228_v27 = vunpack.i.h.bf16 %v8479_v7  ;;  %v7248_v42 = vunpack.i.h.bf16 %v8477_v5  ;;  %v7247_v43 = vunpack.i.l.bf16 %v8477_v5 }
 0x512   : > { %6696 = vmatpush3.bf16.msra.mxu1 %v6695_v3  ;;  %6084 = vmatmul.mubr.msk.f32.vlgmr.msra.gmra.mrb[16].mxu0 %vm4226_vm0, %v6081_v31 }
 0x513   : > { %6697 = vmatprep.subr.bf16.mxu1 %v7426_v2  ;;  %6668 = vmatpush3.bf16.msra.mxu0 %v6667_v8  ;;  %v4545_v8 = vsel %vm781_vm3, %v7197_v40, %v7202_v37  ;;  %v4730_v24 = vsel %vm976_vm6, %v7222_v23, %v7227_v19 }
 0x514   : > { %v7261_v30 = vpop.permute.xlu0 %7260  ;;  %v8494_v41 = vpop.permute.xlu1 %7230  ;;  %6384 = vmatprep.mubr.msk.f32.mxu0 %vm7427_vm15, %v7417_v10  ;;  %6669 = vmatprep.subr.bf16.mxu0 %v7426_v2  ;;  %v6676_v50 = vpack.c.bf16 %v4546_v48, %v4545_v8 }
 0x515   : > { %v7263_v46 = vunpack.i.h.bf16 %v7261_v30  ;;  %v7262_v47 = vunpack.i.l.bf16 %v7261_v30  ;;  %v7233_v35 = vunpack.i.h.bf16 %v8494_v41 }
 0x517   : > { %6671 = vmatpush3.bf16.msra.mxu0 %v6670_v11  ;;  %v4549_v54 = vsel %vm781_vm3, %v7262_v47, %v7197_v40  ;;  %v4550_v55 = vsel %vm781_vm3, %v7263_v46, %v7198_v39  ;;  %v4541_v26 = vsel %vm781_vm3, %v7202_v37, %v7262_v47  ;;  %v4542_v4 = vsel %vm781_vm3, %v7203_v36, %v7263_v46  ;;  %v6089_v47 = vld [vmem:[%s8857_s8 + $0x4] sm:$0x3] }
 0x518   : > { %v8512_v53 = vpop.permute.xlu0 %7265  ;;  %v8514_v56 = vpop.permute.xlu1 %7240  ;;  %6673 = vmatprep.subr.bf16.mxu0 %v6672_v45  ;;  %v6678_v11 = vpack.c.bf16 %v4550_v55, %v4549_v54  ;;  %v6684_v36 = vpack.c.bf16 %v4542_v4, %v4541_v26  ;;  %v7232_v37 = vunpack.i.l.bf16 %v8494_v41  ;;  %v4731_v41 = vsel %vm976_vm6, %v7223_v21, %v7228_v27 }
 0x519   : > { %v7243_v1 = vunpack.i.h.bf16 %v8514_v56  ;;  %v7242_v17 = vunpack.i.l.bf16 %v8514_v56  ;;  %v6690_v8 = vpack.c.bf16 %v4731_v41, %v4730_v24  ;;  %v4914_v5 = vsel %vm1171_vm7, %v7233_v35, %v7238_v22 }
 0x51a   : > { %6385 = vmatmul.mubr.msk.f32.vlgmr.msra.gmra.mrb[20].mxu0 %vm4226_vm0, %v6081_v31  ;;  %v4732_v31 = vsel %vm976_vm6, %v7217_v29, %v7207_v52  ;;  %v4913_v48 = vsel %vm1171_vm7, %v7232_v37, %v7237_v44  ;;  %v7267_v62 = vunpack.i.l.bf16 %v8512_v53 }
 0x51b   : > { %6675 = vmatpush1.bf16.msra.mxu0 %v6674_v49  ;;  %4620 = vmatprep.mubr.f32.mxu0 %v7417_v10  ;;  %v4910_v25 = vsel %vm1171_vm7, %v7238_v22, %v7243_v1  ;;  %v4909_v28 = vsel %vm1171_vm7, %v7237_v44, %v7242_v17  ;;  %v6688_v40 = vpack.c.bf16 %v4733_v33, %v4732_v31 }
 0x51c   : > { %v8530_v57 = vpop.permute.xlu0 %7275  ;;  %v8532_v58 = vpop.permute.xlu1 %7250  ;;  %6677 = vmatprep.subr.bf16.mxu0 %v6676_v50  ;;  %v6709_v56 = vpack.c.bf16 %v4910_v25, %v4909_v28  ;;  %v4917_v61 = vsel %vm1171_vm7, %v7242_v17, %v7232_v37  ;;  %v4918_v0 = vsel %vm1171_vm7, %v7243_v1, %v7233_v35  ;;  %v6700_v17 = vpack.c.bf16 %v4914_v5, %v4913_v48 }
 0x51d   : > { %v7253_v45 = vunpack.i.h.bf16 %v8532_v58  ;;  %v7252_v46 = vunpack.i.l.bf16 %v8532_v58  ;;  %v7268_v58 = vunpack.i.h.bf16 %v8512_v53  ;;  %v7278_v22 = vunpack.i.h.bf16 %v8530_v57 }
 0x51e   : > { %v7277_v44 = vunpack.i.l.bf16 %v8530_v57 }
 0x51f   : > { %6679 = vmatpush1.bf16.msra.mxu0 %v6678_v11 }
 0x520   : > { %v8539_v59 = vpop.permute.xlu0 %7280  ;;  %v8541_v60 = vpop.permute.xlu1 %7255  ;;  %6680 = vmatprep.subr.bf16.mxu0 %v7426_v2 }
 0x521   : > { %v7283_v31 = vunpack.i.h.bf16 %v8539_v59 }
 0x522   : > { %6087 = vmatmul.mubr.msk.f32.vlgmr.msra.gmra.mrb[16].mxu0 %vm4226_vm0, %v6086_v13 }
 0x523   : > { %6682 = vmatpush3.bf16.msra.mxu0 %v6681_v15  ;;  %6395 = vmatprep.mubr.msk.f32.mxu0 %vm7427_vm15, %v7417_v10  ;;  %v4916_v15 = vsel %vm1171_vm7, %v7248_v42, %v7253_v45 }
 0x524   : > { %v7291_v20 = vpop.permute.xlu0 %7290  ;;  %v8566_v34 = vpop.permute.xlu1 %7270  ;;  %6683 = vmatprep.subr.bf16.mxu0 %v7426_v2 }
 0x525   : > { %v7293_v3 = vunpack.i.h.bf16 %v7291_v20  ;;  %v7292_v7 = vunpack.i.l.bf16 %v7291_v20  ;;  %v7273_v51 = vunpack.i.h.bf16 %v8566_v34  ;;  %v7272_v52 = vunpack.i.l.bf16 %v8566_v34 }
 0x526   : > { %v7258_v20 = vunpack.i.h.bf16 %v8541_v60  ;;  %v6702_v34 = vpack.c.bf16 %v4918_v0, %v4917_v61  ;;  %v6095_v61 = vld [vmem:[%s8857_s8 + $0xa] sm:$0x3] }
 0x527   : > { %v4726_v30 = vsel %vm976_vm6, %v7227_v19, %v7292_v7  ;;  %v4727_v29 = vsel %vm976_vm6, %v7228_v27, %v7293_v3  ;;  %6685 = vmatpush3.bf16.msra.mxu0 %v6684_v36  ;;  %v4735_v49 = vsel %vm976_vm6, %v7293_v3, %v7223_v21  ;;  %v4734_v50 = vsel %vm976_vm6, %v7292_v7, %v7222_v23  ;;  %v6092_v7 = vld [vmem:[%s8857_s8 + $0x6] sm:$0x3] }
 0x528   : > { %v6698_v14 = vpack.c.bf16 %v4727_v29, %v4726_v30  ;;  %v8593_v38 = vpop.permute.xlu0 %7295  ;;  %v8595_v39 = vpop.permute.xlu1 %7285  ;;  %6687 = vmatprep.subr.bf16.mxu0 %v6686_v18  ;;  %v7257_v19 = vunpack.i.l.bf16 %v8541_v60  ;;  %v6692_v21 = vpack.c.bf16 %v4735_v49, %v4734_v50  ;;  %v5103_v27 = vsel %vm1366_vm8, %v7268_v58, %v7273_v51 }
 0x529   : > { %v5102_v18 = vsel %vm1366_vm8, %v7267_v62, %v7272_v52  ;;  %v7282_v60 = vunpack.i.l.bf16 %v8539_v59  ;;  %v5099_v41 = vsel %vm1366_vm8, %v7273_v51, %v7258_v20 }
 0x52a   : > { %6699 = vmatpush3.bf16.msra.mxu1 %v6698_v14  ;;  %6396 = vmatmul.mubr.msk.f32.vlgmr.msra.gmra.mrb[22].mxu0 %vm4226_vm0, %v6086_v13  ;;  %v4915_v13 = vsel %vm1171_vm7, %v7247_v43, %v7252_v46  ;;  %v6723_v33 = vpack.c.bf16 %v5103_v27, %v5102_v18  ;;  %v5094_v35 = vsel %vm1366_vm8, %v7257_v19, %v7267_v62 }
 0x52b   : > { %6708 = vmatprep.subr.bf16.mxu1 %v7426_v2  ;;  %6689 = vmatpush1.bf16.msra.mxu0 %v6688_v40  ;;  %v6704_v3 = vpack.c.bf16 %v4916_v15, %v4915_v13  ;;  %v5098_v29 = vsel %vm1366_vm8, %v7272_v52, %v7257_v19  ;;  %v5095_v14 = vsel %vm1366_vm8, %v7258_v20, %v7268_v58  ;;  %v7298_v40 = vunpack.i.h.bf16 %v8593_v38 }
 0x52c   : > { %v7306_v54 = vpop.permute.xlu0 %7305  ;;  %v8618_v55 = vpop.permute.xlu1 %7300  ;;  %6691 = vmatprep.subr.bf16.mxu0 %v6690_v8  ;;  %4805 = vmatprep.mubr.f32.mxu0 %v7417_v10  ;;  %v6714_v49 = vpack.c.bf16 %v5095_v14, %v5094_v35  ;;  %v5100_v52 = vsel %vm1366_vm8, %v7282_v60, %v7277_v44  ;;  %v6716_v58 = vpack.c.bf16 %v5099_v41, %v5098_v29 }
 0x52d   : > { %v7308_v63 = vunpack.i.h.bf16 %v7306_v54  ;;  %v7307_v11 = vunpack.i.l.bf16 %v7306_v54  ;;  %6407 = vmatmul.mubr.msk.f32.vlgmr.msra.gmra.mrb[8].mxu1 %vm4226_vm0, %v6089_v47  ;;  %v7303_v36 = vunpack.i.h.bf16 %v8618_v55  ;;  %v7302_v37 = vunpack.i.l.bf16 %v8618_v55 }
 0x52e   : > { %6710 = vmatpush3.bf16.msra.mxu1 %v6709_v56  ;;  %6417 = vmatprep.mubr.msk.f32.mxu1 %vm7427_vm15, %v7417_v10  ;;  %v5101_v54 = vsel %vm1366_vm8, %v7283_v31, %v7278_v22 }
 0x52f   : > { %v4911_v23 = vsel %vm1171_vm7, %v7252_v46, %v7307_v11  ;;  %v4912_v53 = vsel %vm1171_vm7, %v7253_v45, %v7308_v63  ;;  %6711 = vmatprep.subr.bf16.mxu1 %v7426_v2  ;;  %6693 = vmatpush1.bf16.msra.mxu0 %v6692_v21  ;;  %v4920_v57 = vsel %vm1171_vm7, %v7308_v63, %v7248_v42  ;;  %v7297_v42 = vunpack.i.l.bf16 %v8593_v38 }
 0x530   : > { %v6712_v26 = vpack.c.bf16 %v4912_v53, %v4911_v23  ;;  %v8641_v4 = vpop.permute.xlu0 %7310  ;;  %v8643_v1 = vpop.permute.xlu1 %7320  ;;  %6701 = vmatprep.subr.bf16.mxu0 %v6700_v17  ;;  %v4919_v24 = vsel %vm1171_vm7, %v7307_v11, %v7247_v43  ;;  %v7288_v43 = vunpack.i.h.bf16 %v8595_v39  ;;  %v7287_v45 = vunpack.i.l.bf16 %v8595_v39 }
 0x531   : > { %v6706_v46 = vpack.c.bf16 %v4920_v57, %v4919_v24  ;;  %v5288_v38 = vsel %vm1561_vm9, %v7298_v40, %v7303_v36  ;;  %v5287_v8 = vsel %vm1561_vm9, %v7297_v42, %v7302_v37  ;;  %v6720_v20 = vpack.c.bf16 %v5101_v54, %v5100_v52 }
 0x532   : > { %6713 = vmatpush3.bf16.msra.mxu1 %v6712_v26  ;;  %6090 = vmatmul.mubr.msk.f32.vlgmr.msra.gmra.mrb[16].mxu0 %vm4226_vm0, %v6089_v47  ;;  %v6737_v63 = vpack.c.bf16 %v5288_v38, %v5287_v8  ;;  %v5279_v62 = vsel %vm1561_vm9, %v7287_v45, %v7297_v42  ;;  %v5280_v0 = vsel %vm1561_vm9, %v7288_v43, %v7298_v40 }
 0x533   : > { %6722 = vmatprep.subr.bf16.mxu1 %v7426_v2  ;;  %6703 = vmatpush1.bf16.msra.mxu0 %v6702_v34  ;;  %v7313_v34 = vunpack.i.h.bf16 %v8641_v4  ;;  %v6728_v35 = vpack.c.bf16 %v5280_v0, %v5279_v62 }
 0x534   : > { %v8666_v30 = vpop.permute.xlu0 %7315  ;;  %v7331_v59 = vpop.permute.xlu1 %7330  ;;  %6705 = vmatprep.subr.bf16.mxu0 %v6704_v3  ;;  %4990 = vmatprep.mubr.f32.mxu0 %v7417_v10 }
 0x535   : > { %v7333_v25 = vunpack.i.h.bf16 %v7331_v59  ;;  %v7332_v28 = vunpack.i.l.bf16 %v7331_v59  ;;  %6418 = vmatmul.mubr.msk.f32.vlgmr.msra.gmra.mrb[10].mxu1 %vm4226_vm0, %v6092_v7  ;;  %v7318_v11 = vunpack.i.h.bf16 %v8666_v30  ;;  %v7317_v13 = vunpack.i.l.bf16 %v8666_v30  ;;  %v6098_v59 = vld [vmem:[%s8857_s8 + $0xc] sm:$0x3] }
 0x536   : > { %6724 = vmatpush3.bf16.msra.mxu1 %v6723_v33  ;;  %6428 = vmatprep.mubr.msk.f32.mxu1 %vm7427_vm15, %v7417_v10  ;;  %v7322_v30 = vunpack.i.l.bf16 %v8643_v1 }
 0x537   : > { %v5105_v47 = vsel %vm1366_vm8, %v7333_v25, %v7283_v31  ;;  %v5104_v56 = vsel %vm1366_vm8, %v7332_v28, %v7282_v60  ;;  %6725 = vmatprep.subr.bf16.mxu1 %v7426_v2  ;;  %6707 = vmatpush1.bf16.msra.mxu0 %v6706_v46  ;;  %v5096_v50 = vsel %vm1366_vm8, %v7277_v44, %v7332_v28 }
 0x538   : > { %v6726_v39 = vpack.c.bf16 %v5105_v47, %v5104_v56  ;;  %v8692_v48 = vpop.permute.xlu0 %7325  ;;  %v8694_v5 = vpop.permute.xlu1 %7335  ;;  %v5097_v51 = vsel %vm1366_vm8, %v7278_v22, %v7333_v25  ;;  %6715 = vmatprep.subr.bf16.mxu0 %v6714_v49  ;;  %v7312_v22 = vunpack.i.l.bf16 %v8641_v4  ;;  %v5284_v4 = vsel %vm1561_vm9, %v7303_v36, %v7288_v43 }
 0x539   : > { %v7328_v15 = vunpack.i.h.bf16 %v8692_v48  ;;  %v7327_v19 = vunpack.i.l.bf16 %v8692_v48  ;;  %v6718_v53 = vpack.c.bf16 %v5097_v51, %v5096_v50  ;;  %v7338_v27 = vunpack.i.h.bf16 %v8694_v5 }
 0x53a   : > { %6727 = vmatpush3.bf16.msra.mxu1 %v6726_v39  ;;  %6093 = vmatmul.mubr.msk.f32.vlgmr.msra.gmra.mrb[16].mxu0 %vm4226_vm0, %v6092_v7  ;;  %v7337_v18 = vunpack.i.l.bf16 %v8694_v5  ;;  %v5283_v7 = vsel %vm1561_vm9, %v7302_v37, %v7287_v45  ;;  %v7323_v37 = vunpack.i.h.bf16 %v8643_v1  ;;  %v5285_v25 = vsel %vm1561_vm9, %v7317_v13, %v7312_v22 }
 0x53b   : > { %6736 = vmatprep.subr.bf16.mxu1 %v7426_v2  ;;  %6717 = vmatpush1.bf16.msra.mxu0 %v6716_v58  ;;  %v5473_v57 = vsel %vm1756_vm10, %v7328_v15, %v7338_v27  ;;  %v6730_v29 = vpack.c.bf16 %v5284_v4, %v5283_v7  ;;  %v5286_v28 = vsel %vm1561_vm9, %v7318_v11, %v7313_v34 }
 0x53c   : > { %v8720_v21 = vpop.permute.xlu0 %7340  ;;  %v7351_v23 = vpop.permute.xlu1 %7350  ;;  %6719 = vmatprep.subr.bf16.mxu0 %v6718_v53  ;;  %5175 = vmatprep.mubr.f32.mxu0 %v7417_v10  ;;  %v5472_v24 = vsel %vm1756_vm10, %v7327_v19, %v7337_v18  ;;  %v5464_v42 = vsel %vm1756_vm10, %v7322_v30, %v7327_v19  ;;  %v5465_v43 = vsel %vm1756_vm10, %v7323_v37, %v7328_v15 }
 0x53d   : > { %v7353_v26 = vunpack.i.h.bf16 %v7351_v23  ;;  %v7352_v17 = vunpack.i.l.bf16 %v7351_v23  ;;  %6429 = vmatmul.mubr.msk.f32.vlgmr.msra.gmra.mrb[12].mxu1 %vm4226_vm0, %v6095_v61  ;;  %v6751_v14 = vpack.c.bf16 %v5473_v57, %v5472_v24  ;;  %v6734_v38 = vpack.c.bf16 %v5286_v28, %v5285_v25  ;;  %v6101_v23 = vld [vmem:[%s8857_s8 + $0xe] sm:$0x3]  ;;  %v6104_v28 = vld [vmem:[%s8857_s8 + $0x10] sm:$0x3] }
 0x53e   : > { %6738 = vmatpush3.bf16.msra.mxu1 %v6737_v63  ;;  %6439 = vmatprep.mubr.msk.f32.mxu1 %vm7427_vm15, %v7417_v10  ;;  %v5468_v8 = vsel %vm1756_vm10, %v7337_v18, %v7322_v30  ;;  %v5469_v39 = vsel %vm1756_vm10, %v7338_v27, %v7323_v37  ;;  %v7343_v48 = vunpack.i.h.bf16 %v8720_v21  ;;  %v7342_v5 = vunpack.i.l.bf16 %v8720_v21 }
 0x53f   : > { %v5290_v44 = vsel %vm1561_vm9, %v7353_v26, %v7318_v11  ;;  %v5289_v3 = vsel %vm1561_vm9, %v7352_v17, %v7317_v13  ;;  %6739 = vmatprep.subr.bf16.mxu1 %v7426_v2  ;;  %6721 = vmatpush1.bf16.msra.mxu0 %v6720_v20  ;;  %v5281_v55 = vsel %vm1561_vm9, %v7312_v22, %v7352_v17 }
 0x540   : > { %v6740_v31 = vpack.c.bf16 %v5290_v44, %v5289_v3  ;;  %v8741_v60 = vpop.permute.xlu0 %7345  ;;  %v8743_v33 = vpop.permute.xlu1 %7355  ;;  %v5282_v36 = vsel %vm1561_vm9, %v7313_v34, %v7353_v26  ;;  %6729 = vmatprep.subr.bf16.mxu0 %v6728_v35  ;;  %v6742_v63 = vpack.c.bf16 %v5465_v43, %v5464_v42  ;;  %v6744_v15 = vpack.c.bf16 %v5469_v39, %v5468_v8 }
 0x541   : > { %v6732_v40 = vpack.c.bf16 %v5282_v36, %v5281_v55  ;;  %v7348_v45 = vunpack.i.h.bf16 %v8741_v60  ;;  %v7347_v46 = vunpack.i.l.bf16 %v8741_v60  ;;  %v7358_v19 = vunpack.i.h.bf16 %v8743_v33 }
 0x542   : > { %6741 = vmatpush3.bf16.msra.mxu1 %v6740_v31  ;;  %6096 = vmatmul.mubr.msk.f32.vlgmr.msra.gmra.mrb[16].mxu0 %vm4226_vm0, %v6095_v61  ;;  %v7357_v21 = vunpack.i.l.bf16 %v8743_v33 }
 0x543   : > { %6750 = vmatprep.subr.bf16.mxu1 %v7426_v2  ;;  %6731 = vmatpush1.bf16.msra.mxu0 %v6730_v29  ;;  %v5470_v53 = vsel %vm1756_vm10, %v7347_v46, %v7342_v5  ;;  %v5471_v27 = vsel %vm1756_vm10, %v7348_v45, %v7343_v48 }
 0x544   : > { %v7361_v41 = vpop.permute.xlu0 %7360  ;;  %v7366_v1 = vpop.permute.xlu1 %7365  ;;  %6733 = vmatprep.subr.bf16.mxu0 %v6732_v40  ;;  %5360 = vmatprep.mubr.f32.mxu0 %v7417_v10  ;;  %v6748_v33 = vpack.c.bf16 %v5471_v27, %v5470_v53 }
 0x545   : > { %v7368_v47 = vunpack.i.h.bf16 %v7366_v1  ;;  %v7367_v56 = vunpack.i.l.bf16 %v7366_v1  ;;  %6440 = vmatmul.mubr.msk.f32.vlgmr.msra.gmra.mrb[14].mxu1 %vm4226_vm0, %v6098_v59  ;;  %v7363_v51 = vunpack.i.h.bf16 %v7361_v41  ;;  %v7362_v52 = vunpack.i.l.bf16 %v7361_v41 }
 0x546   : > { %6752 = vmatpush3.bf16.msra.mxu1 %v6751_v14  ;;  %6450 = vmatprep.mubr.msk.f32.mxu1 %vm7427_vm15, %v7417_v10 }
 0x547   : > { %v5475_v49 = vsel %vm1756_vm10, %v7368_v47, %v7348_v45  ;;  %v5474_v50 = vsel %vm1756_vm10, %v7367_v56, %v7347_v46  ;;  %6753 = vmatprep.subr.bf16.mxu1 %v7426_v2  ;;  %6735 = vmatpush1.bf16.msra.mxu0 %v6734_v38  ;;  %v5466_v0 = vsel %vm1756_vm10, %v7342_v5, %v7367_v56 }
 0x548   : > { %v6754_v54 = vpack.c.bf16 %v5475_v49, %v5474_v50  ;;  %v7376_v58 = vpop.permute.xlu0 %7375  ;;  %v7371_v61 = vpop.permute.xlu1 %7370  ;;  %v5467_v13 = vsel %vm1756_vm10, %v7343_v48, %v7368_v47  ;;  %6743 = vmatprep.subr.bf16.mxu0 %v6742_v63  ;;  %v5649_v44 = vsel %vm1951_vm11, %v7357_v21, %v7362_v52  ;;  %v5650_v3 = vsel %vm1951_vm11, %v7358_v19, %v7363_v51 }
 0x549   : > { %v7373_v11 = vunpack.i.h.bf16 %v7371_v61  ;;  %v7372_v62 = vunpack.i.l.bf16 %v7371_v61  ;;  %v6746_v22 = vpack.c.bf16 %v5467_v13, %v5466_v0  ;;  %v7378_v35 = vunpack.i.h.bf16 %v7376_v58 }
 0x54a   : > { %6755 = vmatpush3.bf16.msra.mxu1 %v6754_v54  ;;  %6099 = vmatmul.mubr.msk.f32.vlgmr.msra.gmra.mrb[16].mxu0 %vm4226_vm0, %v6098_v59  ;;  %v7377_v57 = vunpack.i.l.bf16 %v7376_v58  ;;  %v6756_v59 = vpack.c.bf16 %v5650_v3, %v5649_v44 }
 0x54b   : > { %v5658_v18 = vsel %vm1951_vm11, %v7363_v51, %v7373_v11  ;;  %v5657_v26 = vsel %vm1951_vm11, %v7362_v52, %v7372_v62  ;;  %6764 = vmatprep.subr.bf16.mxu1 %v7426_v2  ;;  %6745 = vmatpush1.bf16.msra.mxu0 %v6744_v15  ;;  %v5653_v36 = vsel %vm1951_vm11, %v7372_v62, %v7357_v21 }
 0x54c   : > { %v6765_v17 = vpack.c.bf16 %v5658_v18, %v5657_v26  ;;  %v7386_v20 = vpop.permute.xlu0 %7385  ;;  %v7381_v34 = vpop.permute.xlu1 %7380  ;;  %6747 = vmatprep.subr.bf16.mxu0 %v6746_v22  ;;  %5545 = vmatprep.mubr.f32.mxu0 %v7417_v10  ;;  %v5654_v37 = vsel %vm1951_vm11, %v7373_v11, %v7358_v19  ;;  %v7428_v19 = vmov 1983009808  }
 0x54d   : > { %v7388_v7 = vunpack.i.h.bf16 %v7386_v20  ;;  %v7387_v4 = vunpack.i.l.bf16 %v7386_v20  ;;  %v7383_v31 = vunpack.i.h.bf16 %v7381_v34  ;;  %v7382_v60 = vunpack.i.l.bf16 %v7381_v34  ;;  %6451 = vmatmul.mubr.msk.f32.vlgmr.msra.gmra.mrb[16].mxu1 %vm4226_vm0, %v6101_v23 }
 0x54e   : > { %6766 = vmatpush3.bf16.msra.mxu1 %v6765_v17  ;;  %6461 = vmatprep.mubr.msk.f32.mxu1 %vm7427_vm15, %v7417_v10  ;;  %v6758_v14 = vpack.c.bf16 %v5654_v37, %v5653_v36  ;;  %v5827_v21 = vunpack.c.l.s4 %v7428_v19 }
 0x54f   : > { %v5660_v24 = vsel %vm1951_vm11, %v7383_v31, %v7388_v7  ;;  %v5659_v55 = vsel %vm1951_vm11, %v7382_v60, %v7387_v4  ;;  %6767 = vmatprep.subr.bf16.mxu1 %v7426_v2  ;;  %6749 = vmatpush1.bf16.msra.mxu0 %v6748_v33  ;;  %v5651_v29 = vsel %vm1951_vm11, %v7377_v57, %v7382_v60 }
 0x550   : > { %v6768_v30 = vpack.c.bf16 %v5660_v24, %v5659_v55  ;;  %v5652_v25 = vsel %vm1951_vm11, %v7378_v35, %v7383_v31  ;;  %6757 = vmatprep.subr.bf16.mxu0 %v6756_v59  ;;  %v5655_v2 = vsel %vm1951_vm11, %v7387_v4, %v7377_v57  ;;  %v5656_v41 = vsel %vm1951_vm11, %v7388_v7, %v7378_v35 }
 0x551   : > { %v6760_v1 = vpack.c.bf16 %v5652_v25, %v5651_v29  ;;  %v6762_v40 = vpack.c.bf16 %v5656_v41, %v5655_v2  ;;  %v5828_v27 = vunpack.c.0.s8 %v5827_v21 }
 0x552   : > { %6769 = vmatpush3.bf16.msra.mxu1 %v6768_v30  ;;  %6102 = vmatmul.mubr.msk.f32.vlgmr.msra.gmra.mrb[16].mxu0 %vm4226_vm0, %v6101_v23 }
 0x553   : > { %6759 = vmatpush1.bf16.msra.mxu0 %v6758_v14  ;;  %5730 = vmatprep.mubr.f32.mxu0 %v7417_v10  ;;  %v5831_v44 = vsub.s32 %v5828_v27, %v7875_v32 }
 0x554   : > { %6761 = vmatprep.subr.bf16.mxu0 %v6760_v1 }
 0x555   : > { %6462 = vmatmul.mubr.msk.f32.vlgmr.msra.gmra.mrb[18].mxu1 %vm4226_vm0, %v6104_v28 }
 0x557   : > { %6763 = vmatpush1.bf16.msra.mxu0 %v6762_v40 }
 0x55a   : > { %6105 = vmatmul.mubr.msk.f32.vlgmr.msra.gmra.mrb[16].mxu0 %vm4226_vm0, %v6104_v28 }
 0x55d   : > { %v5814_v23 = vpop.permute.xlu1 %5813 }
 0x5dd   : > { %v4367_v42 = vpop.f32.mrb[18].mxu0 }
 0x5de   : > { %v6375_v43 = vpop.f32.mrb[19].mxu0 }
 0x5ed   : > { %v4511_v45 = vpop.f32.mrb[20].mxu0 }
 0x5ee   : > { %v4512_v46 = vadd.f32 %v4511_v45, %v4367_v42  ;;  %v6386_v47 = vpop.f32.mrb[21].mxu0 }
 0x5fd   : > { %v4693_v16 = vpop.f32.mrb[22].mxu0 }
 0x5fe   : > { %v4699_v56 = vadd.f32 %v4693_v16, %v4512_v46  ;;  %v6397_v8 = vpop.f32.mrb[23].mxu0 }
 0x600   : > { %v4878_v38 = vpop.f32.mrb[8].mxu1 }
 0x601   : > { %v6408_v39 = vpop.f32.mrb[9].mxu1  ;;  %v4884_v48 = vadd.f32 %v4878_v38, %v4699_v56 }
 0x608   : > { %v5063_v5 = vpop.f32.mrb[10].mxu1 }
 0x609   : > { %v5069_v49 = vadd.f32 %v5063_v5, %v4884_v48  ;;  %v6419_v50 = vpop.f32.mrb[11].mxu1 }
 0x610   : > { %v5248_v51 = vpop.f32.mrb[12].mxu1 }
 0x611   : > { %v5254_v10 = vadd.f32 %v5248_v51, %v5069_v49  ;;  %v6430_v52 = vpop.f32.mrb[13].mxu1 }
 0x618   : > { %v5433_v54 = vpop.f32.mrb[14].mxu1 }
 0x619   : > { %v5439_v58 = vadd.f32 %v5433_v54, %v5254_v10  ;;  %v6441_v61 = vpop.f32.mrb[15].mxu1 }
 0x620   : > { %v5618_v63 = vpop.f32.mrb[16].mxu1 }
 0x621   : > { %v5624_v11 = vadd.f32 %v5618_v63, %v5439_v58  ;;  %v6452_v62 = vpop.f32.mrb[17].mxu1 }
 0x628   : > { %v5803_v0 = vpop.f32.mrb[18].mxu1 }
 0x629   : > { %v5809_v13 = vadd.f32 %v5803_v0, %v5624_v11  ;;  %v6463_v15 = vpop.f32.mrb[19].mxu1 }
 0x62b   : > { %v5818_v53 = vadd.f32 %v5814_v23, %v5809_v13 }
 0x62d   : > { %v5732_v18 = vpop.f32.mrb[16].mxu0  ;;  %v5821_v22 = vmul.f32 %v5818_v53, %v7885_v9 }
 0x62e   : > { %v5816_v26 = vadd.f32 %v5814_v23, %v5732_v18  ;;  %v5734_v17 = vpop.f32.mrb[17].mxu0 }
 0x62f   : > { %v5817_v20 = vadd.f32 %v5814_v23, %v5734_v17  ;;  %v5839_v4 = vrot.slane %v5821_v22, %v5831_v44 }
 0x630   : > { %v5819_v34 = vmul.f32 %v5816_v26, %v7883_v6 }
 0x631   : > { %v5820_v3 = vmul.f32 %v5817_v20, %v7887_v12 }
 0x633   : > { %v5825_v7 = vcombine.low %v5819_v34, %v5820_v3 }
 0x635   : > { %v5832_v31 = vrot.slane %v5825_v7, %v5831_v44 }
 0x637   : > { %v5840_v60 = vcombine.low %v5832_v31, %v5839_v4 }
 0x639   : > { %5842 = vst [vmem:[%s399_s14] sm:$0x3f] %v5840_v60 }
 0x63a PF: > { %s22_s17 = sadd.s32 1, %s7413_s17  }
 0x63b   : > { %p19_p4 = scmp.ge.s32.totalorder %s22_s17, 4  }
 0x63d   :  { %21 = sbr.rel (!%p19_p4) target bundleno = 1 (0x1), region = 126 }

</bundles_post_ra>
